<compile_context>
chip_gen: v7x
topology: tpu7x:2x2x1
jax: 0.10.0
libtpu: 0.0.40
codegen_flags: <defaults>
</compile_context>

<pallas_src>
import functools

import numpy as np
import jax
import jax.numpy as jnp
from jax.experimental import pallas as pl
from jax.experimental.pallas import tpu as pltpu

EPS = 1e-5  # torch.nn.GroupNorm default eps


# ---------------------------------------------------------------- kernel -----

def _gn_silu(z, gmat, gmatT, gamma, beta):
    """GroupNorm (stats over spatial x channels-in-group) + SiLU on (HW, C).

    Affine folded to per-channel scale/bias so per-element work is one mul +
    one add (+ SiLU); the tiny group-mean reductions ride the otherwise-idle
    MXU via a precomputed one-hot matrix and its transpose.
    """
    hw, c = z.shape
    cg = c // gmat.shape[1]
    inv = 1.0 / (hw * cg)
    s1 = jnp.sum(z, axis=0, keepdims=True)                      # (1, C)
    s2 = jnp.sum(z * z, axis=0, keepdims=True)                  # (1, C)
    gmean = jnp.dot(s1, gmat, preferred_element_type=jnp.float32) * inv   # (1, G)
    gmean2 = jnp.dot(s2, gmat, preferred_element_type=jnp.float32) * inv  # (1, G)
    # TODO(synk): single-pass E[x^2]-E[x]^2 (clamped); switch to two-pass if
    # production-scale activation magnitudes show precision drift.
    gvar = jnp.maximum(gmean2 - gmean * gmean, 0.0)
    mean_bc = jnp.dot(gmean, gmatT, preferred_element_type=jnp.float32)   # (1, C)
    var_bc = jnp.dot(gvar, gmatT, preferred_element_type=jnp.float32)     # (1, C)
    scale = gamma * jax.lax.rsqrt(var_bc + EPS)                  # (1, C)
    bias = beta - mean_bc * scale                                # (1, C)
    y = z * scale + bias
    return y * jax.nn.sigmoid(y)                                 # SiLU


def _conv3x3(act, hal_ref, w_ref, H, W):
    """3x3 conv, stride 1, pad 1, on a flat (HW, Cin) tile -> (HW, Cout) f32.

    `act` is written once into the interior of the shared halo scratch (the
    1-px border is already zero); each of the 9 taps is a direct ref slice
    feeding one (HW,Cin)x(Cin,Cout) MXU dot, accumulated in f32.
    """
    hw, cin = act.shape
    hal_ref[1:H + 1, 1:W + 1, :cin] = act.astype(hal_ref.dtype).reshape(H, W, cin)
    acc = None
    for dy in range(3):
        for dx in range(3):
            tap = hal_ref[dy:dy + H, dx:dx + W, :cin].reshape(hw, cin)
            p = jnp.dot(tap, w_ref[dy * 3 + dx],
                        preferred_element_type=jnp.float32)
            acc = p if acc is None else acc + p
    return acc


def _resblock_kernel(x_ref, eo_ref,
                     g1_ref, b1_ref, gm1_ref, gm1t_ref, w1_ref,
                     g2_ref, b2_ref, gm2_ref, gm2t_ref, w2_ref,
                     sw_ref, ob_ref,
                     o_ref,
                     hal_ref,
                     *, H, W):
    # Zero ONLY the 1-pixel halo border (top/bottom rows, left/right columns).
    # Conv interiors are fully overwritten below and each conv reads only its
    # own :Cin channels, so every tap read hits {written interior} U {zeroed
    # border}; done every grid step -> no reliance on scratch persistence.
    hp, wp, kc = hal_ref.shape
    zrow = jnp.zeros((1, wp, kc), hal_ref.dtype)
    zcol = jnp.zeros((hp, 1, kc), hal_ref.dtype)
    hal_ref[0:1, :, :] = zrow
    hal_ref[H + 1:H + 2, :, :] = zrow
    hal_ref[:, 0:1, :] = zcol
    hal_ref[:, W + 1:W + 2, :] = zcol

    x = x_ref[0]                                                 # (HW, C) f32

    # in_layers: GroupNorm32 + SiLU + conv3x3 (C -> Cout).
    # eo already holds emb_layers(emb) + conv_in bias (folded in the wrapper).
    h = _gn_silu(x, gm1_ref[...], gm1t_ref[...], g1_ref[...], b1_ref[...])
    h = _conv3x3(h, hal_ref, w1_ref, H, W) + eo_ref[0]

    # out_layers: GroupNorm32 + SiLU + Dropout + conv3x3 (Cout -> Cout).
    # TODO(synk): Dropout treated as eval-mode identity (inference semantics).
    h = _gn_silu(h, gm2_ref[...], gm2t_ref[...], g2_ref[...], b2_ref[...])
    h = _conv3x3(h, hal_ref, w2_ref, H, W)

    # skip_connection (1x1 conv, Cout != C) fused with the residual add.
    # ob = skip_b + conv_out_b (folded in the wrapper).
    skip = jnp.dot(x.astype(sw_ref.dtype), sw_ref[...],
                   preferred_element_type=jnp.float32)
    o_ref[0] = skip + h + ob_ref[...]


# --------------------------------------------------------------- wrapper -----

def _group_onehot(C, G):
    cg = C // G
    return (jnp.arange(C)[:, None] // cg == jnp.arange(G)[None, :]).astype(
        jnp.float32)


def _const_spec(shape):
    zeros = (0,) * len(shape)
    return pl.BlockSpec(shape, lambda n, _z=zeros: _z)


def res_block_forward(x_nchw, emb, params, groups=32, mxu_dtype=jnp.bfloat16):
    """ResBlock._forward (default config), NCHW in / NCHW out.

    mxu_dtype: dtype of the conv/skip MXU operands (bf16 default for v6e/v7x;
    f32 accumulation either way).  Pass jnp.float32 for a bit-tighter check.
    """
    N, C, H, W = x_nchw.shape
    HW = H * W
    Cout = params["conv_in_w"].shape[-1]
    G = groups
    WP = ((W + 2 + 7) // 8) * 8            # halo sublane (W) axis -> 8-multiple

    # TODO(synk): interface kept NCHW/f32 to match the PyTorch module; if the
    # surrounding model is NHWC/bf16, feed it straight through and drop these
    # transposes (each is an extra HBM round trip of the activations).
    x = jnp.transpose(x_nchw, (0, 2, 3, 1)).astype(jnp.float32).reshape(N, HW, C)

    # emb_layers (SiLU + Linear) in plain XLA, with conv_in bias folded in.
    e = emb.astype(jnp.float32)
    eo = (jnp.dot(e * jax.nn.sigmoid(e), params["emb_w"].astype(jnp.float32))
          + params["emb_b"].astype(jnp.float32)
          + params["conv_in_b"].astype(jnp.float32)).reshape(N, 1, Cout)

    def row(p):
        return p.astype(jnp.float32).reshape(1, -1)

    w1 = params["conv_in_w"].astype(jnp.float32).reshape(9, C, Cout).astype(mxu_dtype)
    w2 = params["conv_out_w"].astype(jnp.float32).reshape(9, Cout, Cout).astype(mxu_dtype)
    sw = params["skip_w"].astype(jnp.float32).astype(mxu_dtype)
    ob = row(params["skip_b"]) + row(params["conv_out_b"])       # folded bias
    gm1 = _group_onehot(C, G)
    gm2 = _group_onehot(Cout, G)

    out = pl.pallas_call(
        functools.partial(_resblock_kernel, H=H, W=W),
        out_shape=jax.ShapeDtypeStruct((N, HW, Cout), jnp.float32),
        grid=(N,),
        in_specs=[
            pl.BlockSpec((1, HW, C), lambda n: (n, 0, 0)),        # x
            pl.BlockSpec((1, 1, Cout), lambda n: (n, 0, 0)),      # emb_out + conv_in_b
            _const_spec((1, C)),                                  # gn1 gamma
            _const_spec((1, C)),                                  # gn1 beta
            _const_spec((C, G)),                                  # group one-hot 1
            _const_spec((G, C)),                                  # group one-hot 1 ^T
            _const_spec((9, C, Cout)),                            # conv_in w (9 taps)
            _const_spec((1, Cout)),                               # gn2 gamma
            _const_spec((1, Cout)),                               # gn2 beta
            _const_spec((Cout, G)),                               # group one-hot 2
            _const_spec((G, Cout)),                               # group one-hot 2 ^T
            _const_spec((9, Cout, Cout)),                         # conv_out w (9 taps)
            _const_spec((C, Cout)),                               # skip w
            _const_spec((1, Cout)),                               # skip_b + conv_out_b
        ],
        out_specs=pl.BlockSpec((1, HW, Cout), lambda n: (n, 0, 0)),
        scratch_shapes=[
            # Single shared zero-border halo for both convs (sized for the
            # larger channel count); each conv reads only its own :Cin lanes.
            pltpu.VMEM((H + 2, WP, max(C, Cout)), mxu_dtype),
        ],
        compiler_params=pltpu.CompilerParams(dimension_semantics=("parallel",)),
    )(x, eo,
      row(params["gn1_g"]), row(params["gn1_b"]), gm1, jnp.transpose(gm1), w1,
      row(params["gn2_g"]), row(params["gn2_b"]), gm2, jnp.transpose(gm2), w2,
      sw, ob)

    return jnp.transpose(out.reshape(N, H, W, Cout), (0, 3, 1, 2))  # NCHW


# -------------------------------------------------------- pure-JAX reference -

def _ref_forward(x_nchw, emb, params, groups=32):
    x = jnp.transpose(x_nchw, (0, 2, 3, 1)).astype(jnp.float32)

    def gn(z, gamma, beta):
        N, H, W, C = z.shape
        zg = z.reshape(N, H, W, groups, C // groups)
        mean = zg.mean(axis=(1, 2, 4), keepdims=True)
        var = zg.var(axis=(1, 2, 4), keepdims=True)
        zn = ((zg - mean) / jnp.sqrt(var + EPS)).reshape(N, H, W, C)
        return zn * gamma + beta

    def silu(z):
        return z * jax.nn.sigmoid(z)

    def conv(z, w, b):
        return jax.lax.conv_general_dilated(
            z, w, (1, 1), "SAME",
            dimension_numbers=("NHWC", "HWIO", "NHWC")) + b

    h = silu(gn(x, params["gn1_g"], params["gn1_b"]))
    h = conv(h, params["conv_in_w"], params["conv_in_b"])
    e = silu(emb) @ params["emb_w"] + params["emb_b"]
    h = h + e[:, None, None, :]
    h = silu(gn(h, params["gn2_g"], params["gn2_b"]))
    h = conv(h, params["conv_out_w"], params["conv_out_b"])
    skip = conv(x, params["skip_w"][None, None], params["skip_b"])
    return jnp.transpose(skip + h, (0, 3, 1, 2))


# -------------------------------------------------------------------- main ---

if __name__ == "__main__":
    N, C, Cout, E, H, W = 2, 32, 64, 16, 8, 8   # channels multiple of 32 (GN32)

    key = jax.random.PRNGKey(0)
    kx, ke, k0, k1, k2, k3, k4, k5, k6, k7, k8, k9 = jax.random.split(key, 12)

    x = jax.random.normal(kx, (N, C, H, W), jnp.float32)
    emb = jax.random.normal(ke, (N, E), jnp.float32)

    # Deterministic synthetic parameters (shapes from ResBlock.__init__).
    # NOTE: the original init wraps the last conv in zero_module(); here we use
    # small nonzero weights so the compute path is actually exercised.
    params = {
        "gn1_g": 1.0 + 0.1 * jax.random.normal(k0, (C,), jnp.float32),
        "gn1_b": 0.05 * jax.random.normal(k1, (C,), jnp.float32),
        "conv_in_w": 0.1 * jax.random.normal(k2, (3, 3, C, Cout), jnp.float32),
        "conv_in_b": 0.05 * jax.random.normal(k3, (Cout,), jnp.float32),
        "emb_w": 0.1 * jax.random.normal(k4, (E, Cout), jnp.float32),
        "emb_b": 0.05 * jax.random.normal(k5, (Cout,), jnp.float32),
        "gn2_g": 1.0 + 0.1 * jax.random.normal(k6, (Cout,), jnp.float32),
        "gn2_b": 0.05 * jax.random.normal(k7, (Cout,), jnp.float32),
        "conv_out_w": 0.1 * jax.random.normal(k8, (3, 3, Cout, Cout),
                                              jnp.float32),
        "conv_out_b": jnp.zeros((Cout,), jnp.float32),
        "skip_w": 0.1 * jax.random.normal(k9, (C, Cout), jnp.float32),
        "skip_b": jnp.zeros((Cout,), jnp.float32),
    }

    ref = _ref_forward(x, emb, params)

    # 1) f32-MXU variant: tight structural check against the f32 reference.
    fwd_f32 = jax.jit(lambda xx, ee: res_block_forward(xx, ee, params,
                                                       mxu_dtype=jnp.float32))
    out_f32 = jax.block_until_ready(fwd_f32(x, emb))
    assert out_f32.shape == (N, Cout, H, W), out_f32.shape
    np.testing.assert_allclose(np.asarray(out_f32), np.asarray(ref),
                               rtol=2e-3, atol=2e-3)

    # 2) bf16-MXU variant (default, v6e/v7x perf path): looser tolerance vs the
    #    f32 reference reflects bf16 operand rounding with f32 accumulation.
    fwd = jax.jit(lambda xx, ee: res_block_forward(xx, ee, params))
    out = jax.block_until_ready(fwd(x, emb))
    assert out.shape == (N, Cout, H, W), out.shape
    np.testing.assert_allclose(np.asarray(out), np.asarray(ref),
                               rtol=5e-2, atol=5e-2)

    print("KERNEL_OK")
</pallas_src>

<mosaic_0001>
module attributes {stable_mosaic.version = 11 : i64} {
  func.func @_resblock_kernel(%arg0: i32, %arg1: memref<1x64x32xf32, #tpu.memory_space<vmem>>, %arg2: memref<1x1x64xf32, #tpu.memory_space<vmem>>, %arg3: memref<1x32xf32, #tpu.memory_space<vmem>>, %arg4: memref<1x32xf32, #tpu.memory_space<vmem>>, %arg5: memref<32x32xf32, #tpu.memory_space<vmem>>, %arg6: memref<32x32xf32, #tpu.memory_space<vmem>>, %arg7: memref<9x32x64xf32, #tpu.memory_space<vmem>>, %arg8: memref<1x64xf32, #tpu.memory_space<vmem>>, %arg9: memref<1x64xf32, #tpu.memory_space<vmem>>, %arg10: memref<64x32xf32, #tpu.memory_space<vmem>>, %arg11: memref<32x64xf32, #tpu.memory_space<vmem>>, %arg12: memref<9x64x64xf32, #tpu.memory_space<vmem>>, %arg13: memref<32x64xf32, #tpu.memory_space<vmem>>, %arg14: memref<1x64xf32, #tpu.memory_space<vmem>>, %arg15: memref<1x64x64xf32, #tpu.memory_space<vmem>>, %arg16: memref<10x16x64xf32, #tpu.memory_space<vmem>>) attributes {dimension_semantics = [#tpu.dimension_semantics<parallel>], iteration_bounds = array<i64: 2>, scalar_prefetch = 0 : i64, scratch_operands = 1 : i64, tpu.core_type = #tpu.core_type<tc>, window_params = [{transform_indices = @transform_0, window_bounds = array<i64: 1, 64, 32>}, {transform_indices = @transform_1, window_bounds = array<i64: 1, 1, 64>}, {pipeline_mode = #tpu.pipeline_mode<synchronous>, transform_indices = @transform_2, window_bounds = array<i64: 1, 32>}, {pipeline_mode = #tpu.pipeline_mode<synchronous>, transform_indices = @transform_3, window_bounds = array<i64: 1, 32>}, {pipeline_mode = #tpu.pipeline_mode<synchronous>, transform_indices = @transform_4, window_bounds = array<i64: 32, 32>}, {pipeline_mode = #tpu.pipeline_mode<synchronous>, transform_indices = @transform_5, window_bounds = array<i64: 32, 32>}, {pipeline_mode = #tpu.pipeline_mode<synchronous>, transform_indices = @transform_6, window_bounds = array<i64: 9, 32, 64>}, {pipeline_mode = #tpu.pipeline_mode<synchronous>, transform_indices = @transform_7, window_bounds = array<i64: 1, 64>}, {pipeline_mode = #tpu.pipeline_mode<synchronous>, transform_indices = @transform_8, window_bounds = array<i64: 1, 64>}, {pipeline_mode = #tpu.pipeline_mode<synchronous>, transform_indices = @transform_9, window_bounds = array<i64: 64, 32>}, {pipeline_mode = #tpu.pipeline_mode<synchronous>, transform_indices = @transform_10, window_bounds = array<i64: 32, 64>}, {pipeline_mode = #tpu.pipeline_mode<synchronous>, transform_indices = @transform_11, window_bounds = array<i64: 9, 64, 64>}, {pipeline_mode = #tpu.pipeline_mode<synchronous>, transform_indices = @transform_12, window_bounds = array<i64: 32, 64>}, {pipeline_mode = #tpu.pipeline_mode<synchronous>, transform_indices = @transform_13, window_bounds = array<i64: 1, 64>}, {transform_indices = @transform_14, window_bounds = array<i64: 1, 64, 64>}]} {
    %cst = arith.constant 0.000000e+00 : f32
    %0 = vector.broadcast %cst : f32 to vector<1x16x64xf32>
    %cst_0 = arith.constant 0.000000e+00 : f32
    %1 = vector.broadcast %cst_0 : f32 to vector<10x1x64xf32>
    %c0 = arith.constant 0 : index
    %c0_1 = arith.constant 0 : index
    %c0_2 = arith.constant 0 : index
    %2 = vector.load %arg16[%c0, %c0_1, %c0_2] : memref<10x16x64xf32, #tpu.memory_space<vmem>>, vector<1x16x64xf32>
    tpu.vector_store %arg16[%c0, %c0_1, %c0_2], %0 {strides = array<i32>} : memref<10x16x64xf32, #tpu.memory_space<vmem>>, vector<1x16x64xf32>,
    %c9 = arith.constant 9 : index
    %c0_3 = arith.constant 0 : index
    %c0_4 = arith.constant 0 : index
    %3 = vector.load %arg16[%c9, %c0_3, %c0_4] : memref<10x16x64xf32, #tpu.memory_space<vmem>>, vector<1x16x64xf32>
    tpu.vector_store %arg16[%c9, %c0_3, %c0_4], %0 {strides = array<i32>} : memref<10x16x64xf32, #tpu.memory_space<vmem>>, vector<1x16x64xf32>,
    %c0_5 = arith.constant 0 : index
    %c0_6 = arith.constant 0 : index
    %c0_7 = arith.constant 0 : index
    %4 = vector.load %arg16[%c0_5, %c0_6, %c0_7] : memref<10x16x64xf32, #tpu.memory_space<vmem>>, vector<10x1x64xf32>
    tpu.vector_store %arg16[%c0_5, %c0_6, %c0_7], %1 {strides = array<i32>} : memref<10x16x64xf32, #tpu.memory_space<vmem>>, vector<10x1x64xf32>,
    %c0_8 = arith.constant 0 : index
    %c9_9 = arith.constant 9 : index
    %c0_10 = arith.constant 0 : index
    %5 = vector.load %arg16[%c0_8, %c9_9, %c0_10] : memref<10x16x64xf32, #tpu.memory_space<vmem>>, vector<10x1x64xf32>
    tpu.vector_store %arg16[%c0_8, %c9_9, %c0_10], %1 {strides = array<i32>} : memref<10x16x64xf32, #tpu.memory_space<vmem>>, vector<10x1x64xf32>,
    %c0_11 = arith.constant 0 : index
    %c0_12 = arith.constant 0 : index
    %c0_13 = arith.constant 0 : index
    %6 = vector.load %arg1[%c0_11, %c0_12, %c0_13] : memref<1x64x32xf32, #tpu.memory_space<vmem>>, vector<1x64x32xf32>
    %7 = vector.shape_cast %6 : vector<1x64x32xf32> to vector<64x32xf32>
    %c0_14 = arith.constant 0 : index
    %c0_15 = arith.constant 0 : index
    %8 = vector.load %arg5[%c0_14, %c0_15] : memref<32x32xf32, #tpu.memory_space<vmem>>, vector<32x32xf32>
    %c0_16 = arith.constant 0 : index
    %c0_17 = arith.constant 0 : index
    %9 = vector.load %arg6[%c0_16, %c0_17] : memref<32x32xf32, #tpu.memory_space<vmem>>, vector<32x32xf32>
    %c0_18 = arith.constant 0 : index
    %c0_19 = arith.constant 0 : index
    %10 = vector.load %arg3[%c0_18, %c0_19] : memref<1x32xf32, #tpu.memory_space<vmem>>, vector<1x32xf32>
    %c0_20 = arith.constant 0 : index
    %c0_21 = arith.constant 0 : index
    %11 = vector.load %arg4[%c0_20, %c0_21] : memref<1x32xf32, #tpu.memory_space<vmem>>, vector<1x32xf32>
    %cst_22 = arith.constant dense<0.000000e+00> : vector<32xf32>
    %12 = vector.multi_reduction <add>, %7, %cst_22 [0] : vector<64x32xf32> to vector<32xf32>
    %13 = vector.shape_cast %12 : vector<32xf32> to vector<1x32xf32>
    %14 = arith.mulf %7, %7 : vector<64x32xf32>
    %cst_23 = arith.constant dense<0.000000e+00> : vector<32xf32>
    %15 = vector.multi_reduction <add>, %14, %cst_23 [0] : vector<64x32xf32> to vector<32xf32>
    %16 = vector.shape_cast %15 : vector<32xf32> to vector<1x32xf32>
    %cst_24 = arith.constant dense<0.000000e+00> : vector<1x32xf32>
    %17 = tpu.matmul %13, %8, %cst_24 {dimension_numbers = #tpu.dot_dimension_numbers<[1], [0], [0], [1], [0, 0, 1, 1], [], []>} : vector<1x32xf32>, vector<32x32xf32>, vector<1x32xf32> -> vector<1x32xf32>
    %cst_25 = arith.constant 1.562500e-02 : f32
    %18 = vector.broadcast %cst_25 : f32 to vector<1x32xf32>
    %19 = arith.mulf %17, %18 : vector<1x32xf32>
    %cst_26 = arith.constant dense<0.000000e+00> : vector<1x32xf32>
    %20 = tpu.matmul %16, %8, %cst_26 {dimension_numbers = #tpu.dot_dimension_numbers<[1], [0], [0], [1], [0, 0, 1, 1], [], []>} : vector<1x32xf32>, vector<32x32xf32>, vector<1x32xf32> -> vector<1x32xf32>
    %cst_27 = arith.constant 1.562500e-02 : f32
    %21 = vector.broadcast %cst_27 : f32 to vector<1x32xf32>
    %22 = arith.mulf %20, %21 : vector<1x32xf32>
    %23 = arith.mulf %19, %19 : vector<1x32xf32>
    %24 = arith.subf %22, %23 : vector<1x32xf32>
    %cst_28 = arith.constant 0.000000e+00 : f32
    %25 = vector.broadcast %cst_28 : f32 to vector<1x32xf32>
    %26 = arith.maximumf %24, %25 : vector<1x32xf32>
    %cst_29 = arith.constant dense<0.000000e+00> : vector<1x32xf32>
    %27 = tpu.matmul %19, %9, %cst_29 {dimension_numbers = #tpu.dot_dimension_numbers<[1], [0], [0], [1], [0, 0, 1, 1], [], []>} : vector<1x32xf32>, vector<32x32xf32>, vector<1x32xf32> -> vector<1x32xf32>
    %cst_30 = arith.constant dense<0.000000e+00> : vector<1x32xf32>
    %28 = tpu.matmul %26, %9, %cst_30 {dimension_numbers = #tpu.dot_dimension_numbers<[1], [0], [0], [1], [0, 0, 1, 1], [], []>} : vector<1x32xf32>, vector<32x32xf32>, vector<1x32xf32> -> vector<1x32xf32>
    %cst_31 = arith.constant 9.99999974E-6 : f32
    %29 = vector.broadcast %cst_31 : f32 to vector<1x32xf32>
    %30 = arith.addf %28, %29 : vector<1x32xf32>
    %31 = math.rsqrt %30 : vector<1x32xf32>
    %32 = arith.mulf %10, %31 : vector<1x32xf32>
    %33 = arith.mulf %27, %32 : vector<1x32xf32>
    %34 = arith.subf %11, %33 : vector<1x32xf32>
    %35 = vector.broadcast %32 : vector<1x32xf32> to vector<64x32xf32>
    %36 = arith.mulf %7, %35 : vector<64x32xf32>
    %37 = vector.broadcast %34 : vector<1x32xf32> to vector<64x32xf32>
    %38 = arith.addf %36, %37 : vector<64x32xf32>
    %39 = arith.negf %38 : vector<64x32xf32>
    %40 = math.exp %39 : vector<64x32xf32>
    %cst_32 = arith.constant 1.000000e+00 : f32
    %41 = vector.broadcast %cst_32 : f32 to vector<64x32xf32>
    %42 = arith.addf %41, %40 : vector<64x32xf32>
    %43 = arith.divf %41, %42 : vector<64x32xf32>
    %44 = arith.mulf %38, %43 : vector<64x32xf32>
    %45 = vector.shape_cast %44 : vector<64x32xf32> to vector<8x8x32xf32>
    %c1 = arith.constant 1 : index
    %c1_33 = arith.constant 1 : index
    %c0_34 = arith.constant 0 : index
    %46 = vector.load %arg16[%c1, %c1_33, %c0_34] : memref<10x16x64xf32, #tpu.memory_space<vmem>>, vector<8x8x32xf32>
    tpu.vector_store %arg16[%c1, %c1_33, %c0_34], %45 {strides = array<i32>} : memref<10x16x64xf32, #tpu.memory_space<vmem>>, vector<8x8x32xf32>,
    %c0_35 = arith.constant 0 : index
    %c0_36 = arith.constant 0 : index
    %c0_37 = arith.constant 0 : index
    %47 = vector.load %arg16[%c0_35, %c0_36, %c0_37] : memref<10x16x64xf32, #tpu.memory_space<vmem>>, vector<8x8x32xf32>
    %48 = vector.shape_cast %47 : vector<8x8x32xf32> to vector<64x32xf32>
    %c0_38 = arith.constant 0 : index
    %c0_39 = arith.constant 0 : index
    %c0_40 = arith.constant 0 : index
    %49 = vector.load %arg7[%c0_38, %c0_39, %c0_40] : memref<9x32x64xf32, #tpu.memory_space<vmem>>, vector<1x32x64xf32>
    %50 = vector.shape_cast %49 : vector<1x32x64xf32> to vector<32x64xf32>
    %cst_41 = arith.constant dense<0.000000e+00> : vector<64x64xf32>
    %51 = tpu.matmul %48, %50, %cst_41 {dimension_numbers = #tpu.dot_dimension_numbers<[1], [0], [0], [1], [0, 0, 1, 1], [], []>} : vector<64x32xf32>, vector<32x64xf32>, vector<64x64xf32> -> vector<64x64xf32>
    %c0_42 = arith.constant 0 : index
    %c1_43 = arith.constant 1 : index
    %c0_44 = arith.constant 0 : index
    %52 = vector.load %arg16[%c0_42, %c1_43, %c0_44] : memref<10x16x64xf32, #tpu.memory_space<vmem>>, vector<8x8x32xf32>
    %53 = vector.shape_cast %52 : vector<8x8x32xf32> to vector<64x32xf32>
    %c1_45 = arith.constant 1 : index
    %c0_46 = arith.constant 0 : index
    %c0_47 = arith.constant 0 : index
    %54 = vector.load %arg7[%c1_45, %c0_46, %c0_47] : memref<9x32x64xf32, #tpu.memory_space<vmem>>, vector<1x32x64xf32>
    %55 = vector.shape_cast %54 : vector<1x32x64xf32> to vector<32x64xf32>
    %cst_48 = arith.constant dense<0.000000e+00> : vector<64x64xf32>
    %56 = tpu.matmul %53, %55, %cst_48 {dimension_numbers = #tpu.dot_dimension_numbers<[1], [0], [0], [1], [0, 0, 1, 1], [], []>} : vector<64x32xf32>, vector<32x64xf32>, vector<64x64xf32> -> vector<64x64xf32>
    %57 = arith.addf %51, %56 : vector<64x64xf32>
    %c0_49 = arith.constant 0 : index
    %c2 = arith.constant 2 : index
    %c0_50 = arith.constant 0 : index
    %58 = vector.load %arg16[%c0_49, %c2, %c0_50] : memref<10x16x64xf32, #tpu.memory_space<vmem>>, vector<8x8x32xf32>
    %59 = vector.shape_cast %58 : vector<8x8x32xf32> to vector<64x32xf32>
    %c2_51 = arith.constant 2 : index
    %c0_52 = arith.constant 0 : index
    %c0_53 = arith.constant 0 : index
    %60 = vector.load %arg7[%c2_51, %c0_52, %c0_53] : memref<9x32x64xf32, #tpu.memory_space<vmem>>, vector<1x32x64xf32>
    %61 = vector.shape_cast %60 : vector<1x32x64xf32> to vector<32x64xf32>
    %cst_54 = arith.constant dense<0.000000e+00> : vector<64x64xf32>
    %62 = tpu.matmul %59, %61, %cst_54 {dimension_numbers = #tpu.dot_dimension_numbers<[1], [0], [0], [1], [0, 0, 1, 1], [], []>} : vector<64x32xf32>, vector<32x64xf32>, vector<64x64xf32> -> vector<64x64xf32>
    %63 = arith.addf %57, %62 : vector<64x64xf32>
    %c1_55 = arith.constant 1 : index
    %c0_56 = arith.constant 0 : index
    %c0_57 = arith.constant 0 : index
    %64 = vector.load %arg16[%c1_55, %c0_56, %c0_57] : memref<10x16x64xf32, #tpu.memory_space<vmem>>, vector<8x8x32xf32>
    %65 = vector.shape_cast %64 : vector<8x8x32xf32> to vector<64x32xf32>
    %c3 = arith.constant 3 : index
    %c0_58 = arith.constant 0 : index
    %c0_59 = arith.constant 0 : index
    %66 = vector.load %arg7[%c3, %c0_58, %c0_59] : memref<9x32x64xf32, #tpu.memory_space<vmem>>, vector<1x32x64xf32>
    %67 = vector.shape_cast %66 : vector<1x32x64xf32> to vector<32x64xf32>
    %cst_60 = arith.constant dense<0.000000e+00> : vector<64x64xf32>
    %68 = tpu.matmul %65, %67, %cst_60 {dimension_numbers = #tpu.dot_dimension_numbers<[1], [0], [0], [1], [0, 0, 1, 1], [], []>} : vector<64x32xf32>, vector<32x64xf32>, vector<64x64xf32> -> vector<64x64xf32>
    %69 = arith.addf %63, %68 : vector<64x64xf32>
    %c1_61 = arith.constant 1 : index
    %c1_62 = arith.constant 1 : index
    %c0_63 = arith.constant 0 : index
    %70 = vector.load %arg16[%c1_61, %c1_62, %c0_63] : memref<10x16x64xf32, #tpu.memory_space<vmem>>, vector<8x8x32xf32>
    %71 = vector.shape_cast %70 : vector<8x8x32xf32> to vector<64x32xf32>
    %c4 = arith.constant 4 : index
    %c0_64 = arith.constant 0 : index
    %c0_65 = arith.constant 0 : index
    %72 = vector.load %arg7[%c4, %c0_64, %c0_65] : memref<9x32x64xf32, #tpu.memory_space<vmem>>, vector<1x32x64xf32>
    %73 = vector.shape_cast %72 : vector<1x32x64xf32> to vector<32x64xf32>
    %cst_66 = arith.constant dense<0.000000e+00> : vector<64x64xf32>
    %74 = tpu.matmul %71, %73, %cst_66 {dimension_numbers = #tpu.dot_dimension_numbers<[1], [0], [0], [1], [0, 0, 1, 1], [], []>} : vector<64x32xf32>, vector<32x64xf32>, vector<64x64xf32> -> vector<64x64xf32>
    %75 = arith.addf %69, %74 : vector<64x64xf32>
    %c1_67 = arith.constant 1 : index
    %c2_68 = arith.constant 2 : index
    %c0_69 = arith.constant 0 : index
    %76 = vector.load %arg16[%c1_67, %c2_68, %c0_69] : memref<10x16x64xf32, #tpu.memory_space<vmem>>, vector<8x8x32xf32>
    %77 = vector.shape_cast %76 : vector<8x8x32xf32> to vector<64x32xf32>
    %c5 = arith.constant 5 : index
    %c0_70 = arith.constant 0 : index
    %c0_71 = arith.constant 0 : index
    %78 = vector.load %arg7[%c5, %c0_70, %c0_71] : memref<9x32x64xf32, #tpu.memory_space<vmem>>, vector<1x32x64xf32>
    %79 = vector.shape_cast %78 : vector<1x32x64xf32> to vector<32x64xf32>
    %cst_72 = arith.constant dense<0.000000e+00> : vector<64x64xf32>
    %80 = tpu.matmul %77, %79, %cst_72 {dimension_numbers = #tpu.dot_dimension_numbers<[1], [0], [0], [1], [0, 0, 1, 1], [], []>} : vector<64x32xf32>, vector<32x64xf32>, vector<64x64xf32> -> vector<64x64xf32>
    %81 = arith.addf %75, %80 : vector<64x64xf32>
    %c2_73 = arith.constant 2 : index
    %c0_74 = arith.constant 0 : index
    %c0_75 = arith.constant 0 : index
    %82 = vector.load %arg16[%c2_73, %c0_74, %c0_75] : memref<10x16x64xf32, #tpu.memory_space<vmem>>, vector<8x8x32xf32>
    %83 = vector.shape_cast %82 : vector<8x8x32xf32> to vector<64x32xf32>
    %c6 = arith.constant 6 : index
    %c0_76 = arith.constant 0 : index
    %c0_77 = arith.constant 0 : index
    %84 = vector.load %arg7[%c6, %c0_76, %c0_77] : memref<9x32x64xf32, #tpu.memory_space<vmem>>, vector<1x32x64xf32>
    %85 = vector.shape_cast %84 : vector<1x32x64xf32> to vector<32x64xf32>
    %cst_78 = arith.constant dense<0.000000e+00> : vector<64x64xf32>
    %86 = tpu.matmul %83, %85, %cst_78 {dimension_numbers = #tpu.dot_dimension_numbers<[1], [0], [0], [1], [0, 0, 1, 1], [], []>} : vector<64x32xf32>, vector<32x64xf32>, vector<64x64xf32> -> vector<64x64xf32>
    %87 = arith.addf %81, %86 : vector<64x64xf32>
    %c2_79 = arith.constant 2 : index
    %c1_80 = arith.constant 1 : index
    %c0_81 = arith.constant 0 : index
    %88 = vector.load %arg16[%c2_79, %c1_80, %c0_81] : memref<10x16x64xf32, #tpu.memory_space<vmem>>, vector<8x8x32xf32>
    %89 = vector.shape_cast %88 : vector<8x8x32xf32> to vector<64x32xf32>
    %c7 = arith.constant 7 : index
    %c0_82 = arith.constant 0 : index
    %c0_83 = arith.constant 0 : index
    %90 = vector.load %arg7[%c7, %c0_82, %c0_83] : memref<9x32x64xf32, #tpu.memory_space<vmem>>, vector<1x32x64xf32>
    %91 = vector.shape_cast %90 : vector<1x32x64xf32> to vector<32x64xf32>
    %cst_84 = arith.constant dense<0.000000e+00> : vector<64x64xf32>
    %92 = tpu.matmul %89, %91, %cst_84 {dimension_numbers = #tpu.dot_dimension_numbers<[1], [0], [0], [1], [0, 0, 1, 1], [], []>} : vector<64x32xf32>, vector<32x64xf32>, vector<64x64xf32> -> vector<64x64xf32>
    %93 = arith.addf %87, %92 : vector<64x64xf32>
    %c2_85 = arith.constant 2 : index
    %c2_86 = arith.constant 2 : index
    %c0_87 = arith.constant 0 : index
    %94 = vector.load %arg16[%c2_85, %c2_86, %c0_87] : memref<10x16x64xf32, #tpu.memory_space<vmem>>, vector<8x8x32xf32>
    %95 = vector.shape_cast %94 : vector<8x8x32xf32> to vector<64x32xf32>
    %c8 = arith.constant 8 : index
    %c0_88 = arith.constant 0 : index
    %c0_89 = arith.constant 0 : index
    %96 = vector.load %arg7[%c8, %c0_88, %c0_89] : memref<9x32x64xf32, #tpu.memory_space<vmem>>, vector<1x32x64xf32>
    %97 = vector.shape_cast %96 : vector<1x32x64xf32> to vector<32x64xf32>
    %cst_90 = arith.constant dense<0.000000e+00> : vector<64x64xf32>
    %98 = tpu.matmul %95, %97, %cst_90 {dimension_numbers = #tpu.dot_dimension_numbers<[1], [0], [0], [1], [0, 0, 1, 1], [], []>} : vector<64x32xf32>, vector<32x64xf32>, vector<64x64xf32> -> vector<64x64xf32>
    %99 = arith.addf %93, %98 : vector<64x64xf32>
    %c0_91 = arith.constant 0 : index
    %c0_92 = arith.constant 0 : index
    %c0_93 = arith.constant 0 : index
    %100 = vector.load %arg2[%c0_91, %c0_92, %c0_93] : memref<1x1x64xf32, #tpu.memory_space<vmem>>, vector<1x1x64xf32>
    %101 = vector.shape_cast %100 : vector<1x1x64xf32> to vector<1x64xf32>
    %102 = vector.broadcast %101 : vector<1x64xf32> to vector<64x64xf32>
    %103 = arith.addf %99, %102 : vector<64x64xf32>
    %c0_94 = arith.constant 0 : index
    %c0_95 = arith.constant 0 : index
    %104 = vector.load %arg10[%c0_94, %c0_95] : memref<64x32xf32, #tpu.memory_space<vmem>>, vector<64x32xf32>
    %c0_96 = arith.constant 0 : index
    %c0_97 = arith.constant 0 : index
    %105 = vector.load %arg11[%c0_96, %c0_97] : memref<32x64xf32, #tpu.memory_space<vmem>>, vector<32x64xf32>
    %c0_98 = arith.constant 0 : index
    %c0_99 = arith.constant 0 : index
    %106 = vector.load %arg8[%c0_98, %c0_99] : memref<1x64xf32, #tpu.memory_space<vmem>>, vector<1x64xf32>
    %c0_100 = arith.constant 0 : index
    %c0_101 = arith.constant 0 : index
    %107 = vector.load %arg9[%c0_100, %c0_101] : memref<1x64xf32, #tpu.memory_space<vmem>>, vector<1x64xf32>
    %cst_102 = arith.constant dense<0.000000e+00> : vector<64xf32>
    %108 = vector.multi_reduction <add>, %103, %cst_102 [0] : vector<64x64xf32> to vector<64xf32>
    %109 = vector.shape_cast %108 : vector<64xf32> to vector<1x64xf32>
    %110 = arith.mulf %103, %103 : vector<64x64xf32>
    %cst_103 = arith.constant dense<0.000000e+00> : vector<64xf32>
    %111 = vector.multi_reduction <add>, %110, %cst_103 [0] : vector<64x64xf32> to vector<64xf32>
    %112 = vector.shape_cast %111 : vector<64xf32> to vector<1x64xf32>
    %cst_104 = arith.constant dense<0.000000e+00> : vector<1x32xf32>
    %113 = tpu.matmul %109, %104, %cst_104 {dimension_numbers = #tpu.dot_dimension_numbers<[1], [0], [0], [1], [0, 0, 1, 1], [], []>} : vector<1x64xf32>, vector<64x32xf32>, vector<1x32xf32> -> vector<1x32xf32>
    %cst_105 = arith.constant 7.812500e-03 : f32
    %114 = vector.broadcast %cst_105 : f32 to vector<1x32xf32>
    %115 = arith.mulf %113, %114 : vector<1x32xf32>
    %cst_106 = arith.constant dense<0.000000e+00> : vector<1x32xf32>
    %116 = tpu.matmul %112, %104, %cst_106 {dimension_numbers = #tpu.dot_dimension_numbers<[1], [0], [0], [1], [0, 0, 1, 1], [], []>} : vector<1x64xf32>, vector<64x32xf32>, vector<1x32xf32> -> vector<1x32xf32>
    %cst_107 = arith.constant 7.812500e-03 : f32
    %117 = vector.broadcast %cst_107 : f32 to vector<1x32xf32>
    %118 = arith.mulf %116, %117 : vector<1x32xf32>
    %119 = arith.mulf %115, %115 : vector<1x32xf32>
    %120 = arith.subf %118, %119 : vector<1x32xf32>
    %cst_108 = arith.constant 0.000000e+00 : f32
    %121 = vector.broadcast %cst_108 : f32 to vector<1x32xf32>
    %122 = arith.maximumf %120, %121 : vector<1x32xf32>
    %cst_109 = arith.constant dense<0.000000e+00> : vector<1x64xf32>
    %123 = tpu.matmul %115, %105, %cst_109 {dimension_numbers = #tpu.dot_dimension_numbers<[1], [0], [0], [1], [0, 0, 1, 1], [], []>} : vector<1x32xf32>, vector<32x64xf32>, vector<1x64xf32> -> vector<1x64xf32>
    %cst_110 = arith.constant dense<0.000000e+00> : vector<1x64xf32>
    %124 = tpu.matmul %122, %105, %cst_110 {dimension_numbers = #tpu.dot_dimension_numbers<[1], [0], [0], [1], [0, 0, 1, 1], [], []>} : vector<1x32xf32>, vector<32x64xf32>, vector<1x64xf32> -> vector<1x64xf32>
    %cst_111 = arith.constant 9.99999974E-6 : f32
    %125 = vector.broadcast %cst_111 : f32 to vector<1x64xf32>
    %126 = arith.addf %124, %125 : vector<1x64xf32>
    %127 = math.rsqrt %126 : vector<1x64xf32>
    %128 = arith.mulf %106, %127 : vector<1x64xf32>
    %129 = arith.mulf %123, %128 : vector<1x64xf32>
    %130 = arith.subf %107, %129 : vector<1x64xf32>
    %131 = vector.broadcast %128 : vector<1x64xf32> to vector<64x64xf32>
    %132 = arith.mulf %103, %131 : vector<64x64xf32>
    %133 = vector.broadcast %130 : vector<1x64xf32> to vector<64x64xf32>
    %134 = arith.addf %132, %133 : vector<64x64xf32>
    %135 = arith.negf %134 : vector<64x64xf32>
    %136 = math.exp %135 : vector<64x64xf32>
    %cst_112 = arith.constant 1.000000e+00 : f32
    %137 = vector.broadcast %cst_112 : f32 to vector<64x64xf32>
    %138 = arith.addf %137, %136 : vector<64x64xf32>
    %139 = arith.divf %137, %138 : vector<64x64xf32>
    %140 = arith.mulf %134, %139 : vector<64x64xf32>
    %141 = vector.shape_cast %140 : vector<64x64xf32> to vector<8x8x64xf32>
    %c1_113 = arith.constant 1 : index
    %c1_114 = arith.constant 1 : index
    %c0_115 = arith.constant 0 : index
    %142 = vector.load %arg16[%c1_113, %c1_114, %c0_115] : memref<10x16x64xf32, #tpu.memory_space<vmem>>, vector<8x8x64xf32>
    tpu.vector_store %arg16[%c1_113, %c1_114, %c0_115], %141 {strides = array<i32>} : memref<10x16x64xf32, #tpu.memory_space<vmem>>, vector<8x8x64xf32>,
    %c0_116 = arith.constant 0 : index
    %c0_117 = arith.constant 0 : index
    %c0_118 = arith.constant 0 : index
    %143 = vector.load %arg16[%c0_116, %c0_117, %c0_118] : memref<10x16x64xf32, #tpu.memory_space<vmem>>, vector<8x8x64xf32>
    %144 = vector.shape_cast %143 : vector<8x8x64xf32> to vector<64x64xf32>
    %c0_119 = arith.constant 0 : index
    %c0_120 = arith.constant 0 : index
    %c0_121 = arith.constant 0 : index
    %145 = vector.load %arg12[%c0_119, %c0_120, %c0_121] : memref<9x64x64xf32, #tpu.memory_space<vmem>>, vector<1x64x64xf32>
    %146 = vector.shape_cast %145 : vector<1x64x64xf32> to vector<64x64xf32>
    %cst_122 = arith.constant dense<0.000000e+00> : vector<64x64xf32>
    %147 = tpu.matmul %144, %146, %cst_122 {dimension_numbers = #tpu.dot_dimension_numbers<[1], [0], [0], [1], [0, 0, 1, 1], [], []>} : vector<64x64xf32>, vector<64x64xf32>, vector<64x64xf32> -> vector<64x64xf32>
    %c0_123 = arith.constant 0 : index
    %c1_124 = arith.constant 1 : index
    %c0_125 = arith.constant 0 : index
    %148 = vector.load %arg16[%c0_123, %c1_124, %c0_125] : memref<10x16x64xf32, #tpu.memory_space<vmem>>, vector<8x8x64xf32>
    %149 = vector.shape_cast %148 : vector<8x8x64xf32> to vector<64x64xf32>
    %c1_126 = arith.constant 1 : index
    %c0_127 = arith.constant 0 : index
    %c0_128 = arith.constant 0 : index
    %150 = vector.load %arg12[%c1_126, %c0_127, %c0_128] : memref<9x64x64xf32, #tpu.memory_space<vmem>>, vector<1x64x64xf32>
    %151 = vector.shape_cast %150 : vector<1x64x64xf32> to vector<64x64xf32>
    %cst_129 = arith.constant dense<0.000000e+00> : vector<64x64xf32>
    %152 = tpu.matmul %149, %151, %cst_129 {dimension_numbers = #tpu.dot_dimension_numbers<[1], [0], [0], [1], [0, 0, 1, 1], [], []>} : vector<64x64xf32>, vector<64x64xf32>, vector<64x64xf32> -> vector<64x64xf32>
    %153 = arith.addf %147, %152 : vector<64x64xf32>
    %c0_130 = arith.constant 0 : index
    %c2_131 = arith.constant 2 : index
    %c0_132 = arith.constant 0 : index
    %154 = vector.load %arg16[%c0_130, %c2_131, %c0_132] : memref<10x16x64xf32, #tpu.memory_space<vmem>>, vector<8x8x64xf32>
    %155 = vector.shape_cast %154 : vector<8x8x64xf32> to vector<64x64xf32>
    %c2_133 = arith.constant 2 : index
    %c0_134 = arith.constant 0 : index
    %c0_135 = arith.constant 0 : index
    %156 = vector.load %arg12[%c2_133, %c0_134, %c0_135] : memref<9x64x64xf32, #tpu.memory_space<vmem>>, vector<1x64x64xf32>
    %157 = vector.shape_cast %156 : vector<1x64x64xf32> to vector<64x64xf32>
    %cst_136 = arith.constant dense<0.000000e+00> : vector<64x64xf32>
    %158 = tpu.matmul %155, %157, %cst_136 {dimension_numbers = #tpu.dot_dimension_numbers<[1], [0], [0], [1], [0, 0, 1, 1], [], []>} : vector<64x64xf32>, vector<64x64xf32>, vector<64x64xf32> -> vector<64x64xf32>
    %159 = arith.addf %153, %158 : vector<64x64xf32>
    %c1_137 = arith.constant 1 : index
    %c0_138 = arith.constant 0 : index
    %c0_139 = arith.constant 0 : index
    %160 = vector.load %arg16[%c1_137, %c0_138, %c0_139] : memref<10x16x64xf32, #tpu.memory_space<vmem>>, vector<8x8x64xf32>
    %161 = vector.shape_cast %160 : vector<8x8x64xf32> to vector<64x64xf32>
    %c3_140 = arith.constant 3 : index
    %c0_141 = arith.constant 0 : index
    %c0_142 = arith.constant 0 : index
    %162 = vector.load %arg12[%c3_140, %c0_141, %c0_142] : memref<9x64x64xf32, #tpu.memory_space<vmem>>, vector<1x64x64xf32>
    %163 = vector.shape_cast %162 : vector<1x64x64xf32> to vector<64x64xf32>
    %cst_143 = arith.constant dense<0.000000e+00> : vector<64x64xf32>
    %164 = tpu.matmul %161, %163, %cst_143 {dimension_numbers = #tpu.dot_dimension_numbers<[1], [0], [0], [1], [0, 0, 1, 1], [], []>} : vector<64x64xf32>, vector<64x64xf32>, vector<64x64xf32> -> vector<64x64xf32>
    %165 = arith.addf %159, %164 : vector<64x64xf32>
    %c1_144 = arith.constant 1 : index
    %c1_145 = arith.constant 1 : index
    %c0_146 = arith.constant 0 : index
    %166 = vector.load %arg16[%c1_144, %c1_145, %c0_146] : memref<10x16x64xf32, #tpu.memory_space<vmem>>, vector<8x8x64xf32>
    %167 = vector.shape_cast %166 : vector<8x8x64xf32> to vector<64x64xf32>
    %c4_147 = arith.constant 4 : index
    %c0_148 = arith.constant 0 : index
    %c0_149 = arith.constant 0 : index
    %168 = vector.load %arg12[%c4_147, %c0_148, %c0_149] : memref<9x64x64xf32, #tpu.memory_space<vmem>>, vector<1x64x64xf32>
    %169 = vector.shape_cast %168 : vector<1x64x64xf32> to vector<64x64xf32>
    %cst_150 = arith.constant dense<0.000000e+00> : vector<64x64xf32>
    %170 = tpu.matmul %167, %169, %cst_150 {dimension_numbers = #tpu.dot_dimension_numbers<[1], [0], [0], [1], [0, 0, 1, 1], [], []>} : vector<64x64xf32>, vector<64x64xf32>, vector<64x64xf32> -> vector<64x64xf32>
    %171 = arith.addf %165, %170 : vector<64x64xf32>
    %c1_151 = arith.constant 1 : index
    %c2_152 = arith.constant 2 : index
    %c0_153 = arith.constant 0 : index
    %172 = vector.load %arg16[%c1_151, %c2_152, %c0_153] : memref<10x16x64xf32, #tpu.memory_space<vmem>>, vector<8x8x64xf32>
    %173 = vector.shape_cast %172 : vector<8x8x64xf32> to vector<64x64xf32>
    %c5_154 = arith.constant 5 : index
    %c0_155 = arith.constant 0 : index
    %c0_156 = arith.constant 0 : index
    %174 = vector.load %arg12[%c5_154, %c0_155, %c0_156] : memref<9x64x64xf32, #tpu.memory_space<vmem>>, vector<1x64x64xf32>
    %175 = vector.shape_cast %174 : vector<1x64x64xf32> to vector<64x64xf32>
    %cst_157 = arith.constant dense<0.000000e+00> : vector<64x64xf32>
    %176 = tpu.matmul %173, %175, %cst_157 {dimension_numbers = #tpu.dot_dimension_numbers<[1], [0], [0], [1], [0, 0, 1, 1], [], []>} : vector<64x64xf32>, vector<64x64xf32>, vector<64x64xf32> -> vector<64x64xf32>
    %177 = arith.addf %171, %176 : vector<64x64xf32>
    %c2_158 = arith.constant 2 : index
    %c0_159 = arith.constant 0 : index
    %c0_160 = arith.constant 0 : index
    %178 = vector.load %arg16[%c2_158, %c0_159, %c0_160] : memref<10x16x64xf32, #tpu.memory_space<vmem>>, vector<8x8x64xf32>
    %179 = vector.shape_cast %178 : vector<8x8x64xf32> to vector<64x64xf32>
    %c6_161 = arith.constant 6 : index
    %c0_162 = arith.constant 0 : index
    %c0_163 = arith.constant 0 : index
    %180 = vector.load %arg12[%c6_161, %c0_162, %c0_163] : memref<9x64x64xf32, #tpu.memory_space<vmem>>, vector<1x64x64xf32>
    %181 = vector.shape_cast %180 : vector<1x64x64xf32> to vector<64x64xf32>
    %cst_164 = arith.constant dense<0.000000e+00> : vector<64x64xf32>
    %182 = tpu.matmul %179, %181, %cst_164 {dimension_numbers = #tpu.dot_dimension_numbers<[1], [0], [0], [1], [0, 0, 1, 1], [], []>} : vector<64x64xf32>, vector<64x64xf32>, vector<64x64xf32> -> vector<64x64xf32>
    %183 = arith.addf %177, %182 : vector<64x64xf32>
    %c2_165 = arith.constant 2 : index
    %c1_166 = arith.constant 1 : index
    %c0_167 = arith.constant 0 : index
    %184 = vector.load %arg16[%c2_165, %c1_166, %c0_167] : memref<10x16x64xf32, #tpu.memory_space<vmem>>, vector<8x8x64xf32>
    %185 = vector.shape_cast %184 : vector<8x8x64xf32> to vector<64x64xf32>
    %c7_168 = arith.constant 7 : index
    %c0_169 = arith.constant 0 : index
    %c0_170 = arith.constant 0 : index
    %186 = vector.load %arg12[%c7_168, %c0_169, %c0_170] : memref<9x64x64xf32, #tpu.memory_space<vmem>>, vector<1x64x64xf32>
    %187 = vector.shape_cast %186 : vector<1x64x64xf32> to vector<64x64xf32>
    %cst_171 = arith.constant dense<0.000000e+00> : vector<64x64xf32>
    %188 = tpu.matmul %185, %187, %cst_171 {dimension_numbers = #tpu.dot_dimension_numbers<[1], [0], [0], [1], [0, 0, 1, 1], [], []>} : vector<64x64xf32>, vector<64x64xf32>, vector<64x64xf32> -> vector<64x64xf32>
    %189 = arith.addf %183, %188 : vector<64x64xf32>
    %c2_172 = arith.constant 2 : index
    %c2_173 = arith.constant 2 : index
    %c0_174 = arith.constant 0 : index
    %190 = vector.load %arg16[%c2_172, %c2_173, %c0_174] : memref<10x16x64xf32, #tpu.memory_space<vmem>>, vector<8x8x64xf32>
    %191 = vector.shape_cast %190 : vector<8x8x64xf32> to vector<64x64xf32>
    %c8_175 = arith.constant 8 : index
    %c0_176 = arith.constant 0 : index
    %c0_177 = arith.constant 0 : index
    %192 = vector.load %arg12[%c8_175, %c0_176, %c0_177] : memref<9x64x64xf32, #tpu.memory_space<vmem>>, vector<1x64x64xf32>
    %193 = vector.shape_cast %192 : vector<1x64x64xf32> to vector<64x64xf32>
    %cst_178 = arith.constant dense<0.000000e+00> : vector<64x64xf32>
    %194 = tpu.matmul %191, %193, %cst_178 {dimension_numbers = #tpu.dot_dimension_numbers<[1], [0], [0], [1], [0, 0, 1, 1], [], []>} : vector<64x64xf32>, vector<64x64xf32>, vector<64x64xf32> -> vector<64x64xf32>
    %195 = arith.addf %189, %194 : vector<64x64xf32>
    %c0_179 = arith.constant 0 : index
    %c0_180 = arith.constant 0 : index
    %196 = vector.load %arg13[%c0_179, %c0_180] : memref<32x64xf32, #tpu.memory_space<vmem>>, vector<32x64xf32>
    %cst_181 = arith.constant dense<0.000000e+00> : vector<64x64xf32>
    %197 = tpu.matmul %7, %196, %cst_181 {dimension_numbers = #tpu.dot_dimension_numbers<[1], [0], [0], [1], [0, 0, 1, 1], [], []>} : vector<64x32xf32>, vector<32x64xf32>, vector<64x64xf32> -> vector<64x64xf32>
    %198 = arith.addf %197, %195 : vector<64x64xf32>
    %c0_182 = arith.constant 0 : index
    %c0_183 = arith.constant 0 : index
    %199 = vector.load %arg14[%c0_182, %c0_183] : memref<1x64xf32, #tpu.memory_space<vmem>>, vector<1x64xf32>
    %200 = vector.broadcast %199 : vector<1x64xf32> to vector<64x64xf32>
    %201 = arith.addf %198, %200 : vector<64x64xf32>
    %c0_184 = arith.constant 0 : index
    %c0_185 = arith.constant 0 : index
    %c0_186 = arith.constant 0 : index
    %202 = vector.load %arg15[%c0_184, %c0_185, %c0_186] : memref<1x64x64xf32, #tpu.memory_space<vmem>>, vector<1x64x64xf32>
    %203 = vector.shape_cast %202 : vector<1x64x64xf32> to vector<64x64xf32>
    %204 = vector.shape_cast %201 : vector<64x64xf32> to vector<1x64x64xf32>
    tpu.vector_store %arg15[%c0_184, %c0_185, %c0_186], %204 {strides = array<i32>} : memref<1x64x64xf32, #tpu.memory_space<vmem>>, vector<1x64x64xf32>,
    return
  }
  func.func @transform_0(%arg0: i32) -> (i32, i32, i32) {
    %c0_i32 = arith.constant 0 : i32
    %c0_i32_0 = arith.constant 0 : i32
    %c0_i32_1 = arith.constant 0 : i32
    return %arg0, %c0_i32, %c0_i32_0 : i32, i32, i32
  }
  func.func @transform_1(%arg0: i32) -> (i32, i32, i32) {
    %c0_i32 = arith.constant 0 : i32
    %c0_i32_0 = arith.constant 0 : i32
    %c0_i32_1 = arith.constant 0 : i32
    return %arg0, %c0_i32, %c0_i32_0 : i32, i32, i32
  }
  func.func @transform_2(%arg0: i32) -> (i32, i32) {
    %c0_i32 = arith.constant 0 : i32
    %c0_i32_0 = arith.constant 0 : i32
    %c0_i32_1 = arith.constant 0 : i32
    return %c0_i32, %c0_i32_0 : i32, i32
  }
  func.func @transform_3(%arg0: i32) -> (i32, i32) {
    %c0_i32 = arith.constant 0 : i32
    %c0_i32_0 = arith.constant 0 : i32
    %c0_i32_1 = arith.constant 0 : i32
    return %c0_i32, %c0_i32_0 : i32, i32
  }
  func.func @transform_4(%arg0: i32) -> (i32, i32) {
    %c0_i32 = arith.constant 0 : i32
    %c0_i32_0 = arith.constant 0 : i32
    %c0_i32_1 = arith.constant 0 : i32
    return %c0_i32, %c0_i32_0 : i32, i32
  }
  func.func @transform_5(%arg0: i32) -> (i32, i32) {
    %c0_i32 = arith.constant 0 : i32
    %c0_i32_0 = arith.constant 0 : i32
    %c0_i32_1 = arith.constant 0 : i32
    return %c0_i32, %c0_i32_0 : i32, i32
  }
  func.func @transform_6(%arg0: i32) -> (i32, i32, i32) {
    %c0_i32 = arith.constant 0 : i32
    %c0_i32_0 = arith.constant 0 : i32
    %c0_i32_1 = arith.constant 0 : i32
    %c0_i32_2 = arith.constant 0 : i32
    return %c0_i32, %c0_i32_0, %c0_i32_1 : i32, i32, i32
  }
  func.func @transform_7(%arg0: i32) -> (i32, i32) {
    %c0_i32 = arith.constant 0 : i32
    %c0_i32_0 = arith.constant 0 : i32
    %c0_i32_1 = arith.constant 0 : i32
    return %c0_i32, %c0_i32_0 : i32, i32
  }
  func.func @transform_8(%arg0: i32) -> (i32, i32) {
    %c0_i32 = arith.constant 0 : i32
    %c0_i32_0 = arith.constant 0 : i32
    %c0_i32_1 = arith.constant 0 : i32
    return %c0_i32, %c0_i32_0 : i32, i32
  }
  func.func @transform_9(%arg0: i32) -> (i32, i32) {
    %c0_i32 = arith.constant 0 : i32
    %c0_i32_0 = arith.constant 0 : i32
    %c0_i32_1 = arith.constant 0 : i32
    return %c0_i32, %c0_i32_0 : i32, i32
  }
  func.func @transform_10(%arg0: i32) -> (i32, i32) {
    %c0_i32 = arith.constant 0 : i32
    %c0_i32_0 = arith.constant 0 : i32
    %c0_i32_1 = arith.constant 0 : i32
    return %c0_i32, %c0_i32_0 : i32, i32
  }
  func.func @transform_11(%arg0: i32) -> (i32, i32, i32) {
    %c0_i32 = arith.constant 0 : i32
    %c0_i32_0 = arith.constant 0 : i32
    %c0_i32_1 = arith.constant 0 : i32
    %c0_i32_2 = arith.constant 0 : i32
    return %c0_i32, %c0_i32_0, %c0_i32_1 : i32, i32, i32
  }
  func.func @transform_12(%arg0: i32) -> (i32, i32) {
    %c0_i32 = arith.constant 0 : i32
    %c0_i32_0 = arith.constant 0 : i32
    %c0_i32_1 = arith.constant 0 : i32
    return %c0_i32, %c0_i32_0 : i32, i32
  }
  func.func @transform_13(%arg0: i32) -> (i32, i32) {
    %c0_i32 = arith.constant 0 : i32
    %c0_i32_0 = arith.constant 0 : i32
    %c0_i32_1 = arith.constant 0 : i32
    return %c0_i32, %c0_i32_0 : i32, i32
  }
  func.func @transform_14(%arg0: i32) -> (i32, i32, i32) {
    %c0_i32 = arith.constant 0 : i32
    %c0_i32_0 = arith.constant 0 : i32
    %c0_i32_1 = arith.constant 0 : i32
    return %arg0, %c0_i32, %c0_i32_0 : i32, i32, i32
  }
}

</mosaic_0001>

<bundles_post_ra>
// kernel: _lambda_.1
= control target key start
LH: loop header
LB: loop body
LE: loop exit
PB: predicated region body
PF: predicated region fallthrough
CT: control target
= control target key end

     0   :  { %s7235_s0 = inlined_call_operand.vmem [shape: f32[2,64,32], index: 0, kind: input, shape index: {}]   ;;  %s7236_s1 = inlined_call_operand.vmem [shape: f32[2,1,64], index: 1, kind: input, shape index: {}]   ;;  %s7237_s2 = inlined_call_operand.vmem [shape: f32[1,32], index: 2, kind: input, shape index: {}]   ;;  %s7238_s3 = inlined_call_operand.vmem [shape: f32[1,32], index: 3, kind: input, shape index: {}]   ;;  %s7239_s4 = inlined_call_operand.vmem [shape: f32[32,32], index: 4, kind: input, shape index: {}]   ;;  %s7240_s5 = inlined_call_operand.vmem [shape: f32[32,32], index: 5, kind: input, shape index: {}]   ;;  %s7241_s6 = inlined_call_operand.hbm [shape: f32[9,32,64], index: 6, kind: input, shape index: {}]   ;;  %s7242_s7 = inlined_call_operand.vmem [shape: f32[1,64], index: 7, kind: input, shape index: {}]   ;;  %s7243_s8 = inlined_call_operand.vmem [shape: f32[1,64], index: 8, kind: input, shape index: {}]   ;;  %s7244_s9 = inlined_call_operand.vmem [shape: f32[64,32], index: 9, kind: input, shape index: {}]   ;;  %s7245_s10 = inlined_call_operand.vmem [shape: f32[32,64], index: 10, kind: input, shape index: {}]   ;;  %s7246_s11 = inlined_call_operand.hbm [shape: f32[9,64,64], index: 11, kind: input, shape index: {}]   ;;  %s7247_s12 = inlined_call_operand.vmem [shape: f32[32,64], index: 12, kind: input, shape index: {}]   ;;  %s7248_s13 = inlined_call_operand.vmem [shape: f32[1,64], index: 13, kind: input, shape index: {}]   ;;  %s7249_s14 = inlined_call_operand.hbm [shape: f32[2,64,64], index: 14, kind: output, shape index: {}]  }
   0x1   :  { %7262 = sst [smem:[#allocation19_spill]] %s7249_s14 }
   0x2   :  { %19 = vsyncpa [#allocation4], 0 }
   0x3   :  { %20 = vsyncpa [#allocation7], 0 }
   0x4   :  { %21 = vsyncpa [#allocation5], 0 }
   0x5   :  { %23 = vsyncpa [#allocation5 + $0x1], 0  ;;  %s6278_s29 = smov 0   ;;  %s6280_s30 = smov 0  }
   0x6   :  { %s6282_s15 = smov 0   ;;  %s6284_s16 = smov 0  }
   0x7 LB: > { %7263 = sst [smem:[#allocation12_spill]] %s6179_s29  ;;  %s6299_s17 = sadd.s32 4294967295, %s6191_s16   ;;  %s6191_s16 = sphi %s6284_s16, %s7287_s16   ;;  %s6187_s15 = sphi %s6282_s15, %s7289_s15   ;;  %s6183_s30 = sphi %s6280_s30, %s7291_s30   ;;  %s6179_s29 = sphi %s6278_s29, %s7290_s29  }
   0x8   : > { %7264 = sst [smem:[#allocation13_spill]] %s6187_s15  ;;  %s4438_s18 = sadd.s32 4294967294, %s6191_s16  }
   0x9   : > { %7265 = sst [smem:[#allocation14_spill]] %s6191_s16  ;;  %s6303_s19 = sadd.s32 1, %s6191_s16  }
   0xa   : > { %7266 = sst [smem:[#allocation15_spill]] %s6303_s19  ;;  %s340_s20 = sadd.s32 1, %s6187_s15 }
   0xb   : > { %s337_s21 = ssub.s32 %s6191_s16, %s6303_s19  ;;  %p350_p0 = scmp.ne.s32.totalorder %s6187_s15, %s6183_s30 }
   0xc   : > { %p338_p1 = scmp.eq.s32.totalorder %s337_s21, 0  ;;  %p351_p2 = scmp.eq.s32.totalorder %s6299_s17, 1 }
   0xd   : > { %p356_p3 = scmp.ne.s32.totalorder %s6183_s30, %s6179_s29  ;;  %p357_p4 = scmp.eq.s32.totalorder %s4438_s18, 1 }
   0xe   : > { %s6314_s22 = scalar_select %p338_p1, %s6187_s15, %s340_s20  }
   0xf   : > { %p6316_p5 = por %p351_p2, %p350_p0  ;;  %p6320_p6 = por %p357_p4, %p356_p3 }
  0x10   : > { %7267 = sst [smem:[#allocation16_spill]] %s6314_s22  ;;  %p4439_p7 = scmp.ge.s32.totalorder %s6191_s16, 1 }
  0x11   : > { %s7268_s23 = scalar_select %p6316_p5, 1, 0 }
  0x12   : > { %s7270_s24 = scalar_select %p6320_p6, 1, 0 }
  0x13   : > { %7269 = sst [smem:[#allocation17_spill]] %s7268_s23  ;;  %p364_p8 = scmp.lt.s32.totalorder %s6191_s16, 3 }
  0x14   : > { %7271 = sst [smem:[#allocation18_spill]] %s7270_s24  ;;  %p7255_p9 = scmp.eq.s32.totalorder %s6299_s17, 0 }
  0x15   : > { %p6327_p10 = pnand %p4439_p7, %p364_p8  ;;  %s6193_s26 = smov [#allocation3]  }
  0x16   : > { %s388_s27 = sshll.u32 %s6193_s26, 4  ;;  %s6194_s18 = smov [#allocation6]   ;;  %s389_s27 = int_to_ptr.vmem [resolvable:$true] %s388_s27 }
  0x17   : > { %s7272_s25 = scalar_select %p6327_p10, 1, 0 }
  0x18   : > { %p5932_p11 = pneg %p6327_p10  ;;  %s413_s20 = sshll.u32 %s6194_s18, 4  ;;  %s6339_s20 = int_to_ptr.vmem [resolvable:$true] %s413_s20 }
  0x19   : > { %s6065_s15 = scalar_lea.hbm %s7241_s6, 4608 }
  0x1a   : > { %p6335_p12 = pnand %p7255_p9, %p5932_p11  ;;  %p6066_p13 = scmp.ne.s32.totalorder %s7241_s6, %s6065_s15 }
  0x1b   : > { %p6072_p3 = scmp.lt.u32.totalorder %s6065_s15, %s7241_s6 }
  0x1c   : > { %p6067_p0 = pneg %p6335_p12 }
  0x1e   : > { %p6068_p1 = pnand %p6067_p0, %p6066_p13 }
  0x20   : > { %p6069_p2 = pneg %p6068_p1 }
  0x22   : > { %p6074_p4 = pnand %p6072_p3, %p6069_p2 }
  0x24   : > { %6077 = shalt.err (!%p6074_p4)
}
  0x25   : > { %s6078_s18 = scalar_lea.vmem %s389_s27, 4608  ;;  %p6086_p9 = scmp.lt.s32.totalorder %s389_s27, %s389_s27 }
  0x26   : > { %p6079_p7 = scmp.ne.s32.totalorder %s389_s27, %s6078_s18  ;;  %p6087_p6 = scmp.lt.s32.totalorder %s6078_s18, %s6078_s18 }
  0x28   : > { %p6081_p8 = pnand %p6079_p7, %p6067_p0  ;;  %p6088_p5 = por %p6087_p6, %p6086_p9 }
  0x2a   : > { %p6082_p11 = pneg %p6081_p8 }
  0x2c   : > { %p6089_p10 = pnand %p6088_p5, %p6082_p11 }
  0x2e   : > { %6092 = shalt.err (!%p6089_p10)
}
  0x2f   : > { %s6195_s19 = smov 128   ;;  %s6196_s22 = smov 8  }
  0x30   : > { %5935 = dma.hbm_to_vmem [thread:$0]  (!%p6335_p12), %s7241_s6, 4608, %s389_s27, [#allocation4], %s6195_s19, %s6195_s19, %s6196_s22  }
  0x31   : > { %s6093_s26 = scalar_lea.hbm %s7246_s11, 9216 }
  0x32   : > { %p6094_p13 = scmp.ne.s32.totalorder %s7246_s11, %s6093_s26  ;;  %p6100_p9 = scmp.lt.u32.totalorder %s6093_s26, %s7246_s11 }
  0x34   : > { %p6096_p5 = pnand %p6094_p13, %p6067_p0 }
  0x36   : > { %p6097_p6 = pneg %p6096_p5 }
  0x38   : > { %p6102_p10 = pnand %p6100_p9, %p6097_p6 }
  0x3a   : > { %6105 = shalt.err (!%p6102_p10)
}
  0x3b   : > { %s6106_s27 = scalar_lea.vmem %s6339_s20, 9216  ;;  %p6114_p4 = scmp.lt.s32.totalorder %s6339_s20, %s6339_s20 }
  0x3c   : > { %p6107_p1 = scmp.ne.s32.totalorder %s6339_s20, %s6106_s27  ;;  %p6115_p7 = scmp.lt.s32.totalorder %s6106_s27, %s6106_s27 }
  0x3e   : > { %p6109_p2 = pnand %p6107_p1, %p6067_p0  ;;  %p6116_p8 = por %p6115_p7, %p6114_p4 }
  0x40   : > { %p6110_p3 = pneg %p6109_p2 }
  0x42   : > { %p6117_p11 = pnand %p6116_p8, %p6110_p3 }
  0x44   : > { %6120 = shalt.err (!%p6117_p11)
}
  0x45   : > { %5938 = dma.hbm_to_vmem [thread:$0]  (!%p6335_p12), %s7246_s11, 9216, %s6339_s20, [#allocation7], %s6195_s19, %s6195_s19, %s6196_s22  }
  0x46   : > { %p7274_p13 = scmp.ne.s32.totalorder %s7272_s25, 0 }
  0x47   : > { %p7275_p5 = scmp.eq.s32.totalorder (!%p7274_p13), %s6299_s17, 0 }
  0x48   : > { %449 = sbr.rel (%p7274_p13) target bundleno = 1878 (0x756), region = 76 }
  0x4f   : > { %6166 = dma.done.wait (%p7275_p5), [#allocation4], 4608   ;;  %p7276_p0 = pmov %p7275_p5 }
  0x51   : > { %6168 = vsyncadd (%p7276_p0), [#allocation4], 4294962688  ;;  %p7277_p6 = pmov %p7276_p0 }
  0x52   : > { %p7278_p9 = pmov %p7276_p0 }
  0x53   : > { %6170 = dma.done.wait (%p7277_p6), [#allocation7], 9216  }
  0x54   : > { %6172 = vsyncadd (%p7278_p9), [#allocation7], 4294958080  ;;  %p502_p10 = scmp.lt.s32.totalorder %s6299_s17, 1  ;;  %v6197_v0 = vmov 0.0|0.0   ;;  %vm6198_vm0 = vmmov 0   ;;  %v6199_v1 = vmov 0.0  }
  0x55   : > { %5502 = vmatprep.subr.bf16.mxu0 %v6197_v0  ;;  %4954 = vmatprep.mubr.msk.f32.mxu0 %vm6198_vm0, %v6199_v1  ;;  %vm555_vm1 = vcmask 261120   ;;  %v545_v2 = vld [vmem:[%s7239_s4] sm:$0xff]  ;;  %v546_v3 = vld [vmem:[%s7239_s4 + $0x8] sm:$0xff]  ;;  %v547_v4 = vld [vmem:[%s7239_s4 + $0x10] sm:$0xff]  ;;  %vm510_vm2 = vcmask 523264   ;;  %vm516_vm3 = vcmask 516096  }
  0x56   : > { %s6403_s23 = scalar_select %p502_p10, %s6299_s17, 1  ;;  %5520 = vmatprep.subr.bf16.mxu1 %v6197_v0  ;;  %4987 = vmatprep.mubr.msk.f32.mxu1 %vm6198_vm0, %v6199_v1  ;;  %v6423_v5 = vpack.c.bf16 %v546_v3, %v545_v2  ;;  %v548_v6 = vld [vmem:[%s7239_s4 + $0x18] sm:$0xff]  ;;  %v549_v26 = vld [vmem:[%s7240_s5] sm:$0xff]  ;;  %v550_v27 = vld [vmem:[%s7240_s5 + $0x8] sm:$0xff]  ;;  %511 = vst.msk [vmem:[#allocation2] sm:$0xff] %vm510_vm2, %v6199_v1 }
  0x57   : > { %v6447_v14 = vpack.c.bf16 %v548_v6, %v547_v4  ;;  %v5515_v39 = vpack.c.bf16 %v550_v27, %v549_v26  ;;  %v1022_v26 = vld [vmem:[#allocation3 + $0x28] sm:$0xff]  ;;  %v1023_v27 = vld [vmem:[#allocation3 + $0x30] sm:$0xff]  ;;  %512 = vst.msk [vmem:[#allocation2 + $0x8] sm:$0xff] %vm510_vm2, %v6199_v1  ;;  %514 = vst.msk [vmem:[#allocation2 + $0x90] sm:$0xff] %vm510_vm2, %v6199_v1  ;;  %s499_s26 = sand.u32 1, %s6183_s30   ;;  %s7280_s29 = sld [smem:[#allocation19_spill]] }
  0x58   : > { %s4632_s25 = sshll.u32 %s6403_s23, 6  ;;  %5504 = vmatpush3.bf16.msra.mxu0 %v6423_v5  ;;  %515 = vst.msk [vmem:[#allocation2 + $0x98] sm:$0xff] %vm510_vm2, %v6199_v1  ;;  %s509_s24 = scalar_lea.vmem %s7236_s1, %s6403_s23 }
  0x59   : > { %s6412_s19 = scalar_lea.vmem %s7235_s0, %s4632_s25  ;;  %5505 = vmatprep.subr.bf16.mxu0 %v6197_v0  ;;  %5522 = vmatpush3.bf16.msra.mxu1 %v5515_v39  ;;  %517 = vst.msk [vmem:[#allocation2] sm:$0x1] %vm516_vm3, %v6199_v1  ;;  %518 = vst.msk [vmem:[#allocation2 + $0x10] sm:$0x1] %vm516_vm3, %v6199_v1  ;;  %s4446_s18 = sshll.u32 %s499_s26, 6 }
  0x5a   : > { %v6429_v7 = vld [vmem:[%s6412_s19] sm:$0xff]  ;;  %v6432_v8 = vld [vmem:[%s6412_s19 + $0x8] sm:$0xff]  ;;  %v6435_v9 = vld [vmem:[%s6412_s19 + $0x10] sm:$0xff]  ;;  %5523 = vmatprep.subr.bf16.mxu1 %v6197_v0  ;;  %519 = vst.msk [vmem:[#allocation2 + $0x20] sm:$0x1] %vm516_vm3, %v6199_v1  ;;  %s501_s16 = scalar_lea.vmem [#allocation8], %s4446_s18 }
  0x5b   : > { %v6438_v10 = vld [vmem:[%s6412_s19 + $0x18] sm:$0xff]  ;;  %v556_v11 = vsel %vm555_vm1, %v6429_v7, 0.0  ;;  %v557_v12 = vsel %vm555_vm1, %v6432_v8, 0.0  ;;  %v577_v13 = vmul.f32 %v6429_v7, %v6429_v7  ;;  %v6450_v15 = vld [vmem:[%s6412_s19 + $0x20] sm:$0xff]  ;;  %v559_v17 = vsel %vm555_vm1, %v6435_v9, 0.0  ;;  %v6460_v20 = vld [vmem:[%s6412_s19 + $0x28] sm:$0xff] }
  0x5c   : > { %v558_v16 = vadd.f32 %v557_v12, %v556_v11  ;;  %v561_v18 = vsel %vm555_vm1, %v6438_v10, 0.0  ;;  %v578_v19 = vmul.f32 %v6432_v8, %v6432_v8  ;;  %v579_v22 = vmul.f32 %v6435_v9, %v6435_v9  ;;  %5507 = vmatpush3.bf16.msra.mxu0 %v6447_v14  ;;  %v6477_v28 = vld [vmem:[%s6412_s19 + $0x30] sm:$0xff]  ;;  %v6487_v35 = vld [vmem:[%s6412_s19 + $0x38] sm:$0xff]  ;;  %520 = vst.msk [vmem:[#allocation2 + $0x30] sm:$0x1] %vm516_vm3, %v6199_v1  ;;  %s4633_s25 = sshll.u32 %s6299_s17, 10 }
  0x5d   : > { %v580_v23 = vmul.f32 %v6438_v10, %v6438_v10  ;;  %v563_v24 = vsel %vm555_vm1, %v6450_v15, 0.0  ;;  %v585_v25 = vsel %vm555_vm1, %v577_v13, 0.0  ;;  %v581_v30 = vmul.f32 %v6450_v15, %v6450_v15  ;;  %5508 = vmatprep.subr.bf16.mxu0 %v6197_v0  ;;  %v552_v12 = vld [vmem:[%s7240_s5 + $0x18] sm:$0xff]  ;;  %521 = vst.msk [vmem:[#allocation2 + $0x40] sm:$0x1] %vm516_vm3, %v6199_v1  ;;  %s4345_s28 = sshll.u32 %s501_s16, 4  ;;  %s7186_s15 = scalar_lea.hbm %s7280_s29, %s4633_s25  ;;  %s7188_s28 = int_to_ptr.vmem [resolvable:$true] %s4345_s28 }
  0x5e   : > { %v560_v21 = vadd.f32 %v559_v17, %v558_v16  ;;  %v586_v31 = vsel %vm555_vm1, %v578_v19, 0.0  ;;  %v588_v32 = vsel %vm555_vm1, %v579_v22, 0.0  ;;  %v565_v33 = vsel %vm555_vm1, %v6460_v20, 0.0  ;;  %522 = vst.msk [vmem:[#allocation2 + $0x50] sm:$0x1] %vm516_vm3, %v6199_v1  ;;  %s7194_s17 = scalar_lea.sflag [#allocation5], %s499_s26 }
  0x5f   : > { %v587_v34 = vadd.f32 %v586_v31, %v585_v25  ;;  %v582_v37 = vmul.f32 %v6460_v20, %v6460_v20  ;;  %v590_v38 = vsel %vm555_vm1, %v580_v23, 0.0  ;;  %v567_v40 = vsel %vm555_vm1, %v6477_v28, 0.0  ;;  %v1021_v25 = vld [vmem:[#allocation3 + $0x20] sm:$0xff]  ;;  %523 = vst.msk [vmem:[#allocation2 + $0x60] sm:$0x1] %vm516_vm3, %v6199_v1  ;;  %s6121_s23 = scalar_lea.vmem %s7188_s28, 1024 }
  0x60   : > { %v562_v29 = vadd.f32 %v561_v18, %v560_v21  ;;  %v583_v43 = vmul.f32 %v6477_v28, %v6477_v28  ;;  %v592_v44 = vsel %vm555_vm1, %v581_v30, 0.0  ;;  %v569_v45 = vsel %vm555_vm1, %v6487_v35, 0.0  ;;  %v1024_v30 = vld [vmem:[#allocation3 + $0x38] sm:$0xff]  ;;  %524 = vst.msk [vmem:[#allocation2 + $0x70] sm:$0x1] %vm516_vm3, %v6199_v1  ;;  %p6122_p12 = scmp.ne.s32.totalorder %s7188_s28, %s6121_s23  ;;  %s6200_s21 = smov [#allocation8]  }
  0x61   : > { %v589_v41 = vadd.f32 %v588_v32, %v587_v34  ;;  %v584_v48 = vmul.f32 %v6487_v35, %v6487_v35  ;;  %v594_v49 = vsel %vm555_vm1, %v582_v37, 0.0  ;;  %v5530_v31 = vpack.c.bf16 %v1024_v30, %v1023_v27  ;;  %v1008_v32 = vld [vmem:[#allocation3] sm:$0xff]  ;;  %525 = vst.msk [vmem:[#allocation2 + $0x80] sm:$0x1] %vm516_vm3, %v6199_v1  ;;  %526 = vst.msk [vmem:[#allocation2 + $0x90] sm:$0x1] %vm516_vm3, %v6199_v1 }
  0x62   : > { %v564_v36 = vadd.f32 %v563_v24, %v562_v29  ;;  %v596_v52 = vsel %vm555_vm1, %v583_v43, 0.0  ;;  %v5526_v29 = vpack.c.bf16 %v1022_v26, %v1021_v25  ;;  %527 = vst.msk [vmem:[#allocation2 + $0x9] sm:$0x1] %vm516_vm3, %v6199_v1  ;;  %528 = vst.msk [vmem:[#allocation2 + $0x19] sm:$0x1] %vm516_vm3, %v6199_v1  ;;  %s6125_s18 = sshll.u32 %s6200_s21, 4  ;;  %s6126_s18 = int_to_ptr.vmem [resolvable:$false] %s6125_s18 }
  0x63   : > { %v591_v46 = vadd.f32 %v590_v38, %v589_v41  ;;  %v598_v55 = vsel %vm555_vm1, %v584_v48, 0.0  ;;  %529 = vst.msk [vmem:[#allocation2 + $0x29] sm:$0x1] %vm516_vm3, %v6199_v1  ;;  %530 = vst.msk [vmem:[#allocation2 + $0x39] sm:$0x1] %vm516_vm3, %v6199_v1  ;;  %s6127_s27 = scalar_lea.vmem %s6126_s18, 2048  ;;  %p6128_p4 = scmp.lt.s32.totalorder %s7188_s28, %s6126_s18 }
  0x64   : > { %v566_v42 = vadd.f32 %v565_v33, %v564_v36  ;;  %v1009_v33 = vld [vmem:[#allocation3 + $0x8] sm:$0xff]  ;;  %531 = vst.msk [vmem:[#allocation2 + $0x49] sm:$0x1] %vm516_vm3, %v6199_v1  ;;  %532 = vst.msk [vmem:[#allocation2 + $0x59] sm:$0x1] %vm516_vm3, %v6199_v1  ;;  %p6129_p7 = scmp.lt.s32.totalorder %s6127_s27, %s6121_s23 }
  0x65   : > { %v593_v50 = vadd.f32 %v592_v44, %v591_v46  ;;  %v6535_v34 = vpack.c.bf16 %v1009_v33, %v1008_v32  ;;  %v1012_v36 = vld [vmem:[#allocation2 + $0x1] sm:$0xff]  ;;  %533 = vst.msk [vmem:[#allocation2 + $0x69] sm:$0x1] %vm516_vm3, %v6199_v1  ;;  %534 = vst.msk [vmem:[#allocation2 + $0x79] sm:$0x1] %vm516_vm3, %v6199_v1 }
  0x66   : > { %v568_v47 = vadd.f32 %v567_v40, %v566_v42  ;;  %535 = vst.msk [vmem:[#allocation2 + $0x89] sm:$0x1] %vm516_vm3, %v6199_v1  ;;  %536 = vst.msk [vmem:[#allocation2 + $0x99] sm:$0x1] %vm516_vm3, %v6199_v1  ;;  %v908_v42 = vlaneseq  ;;  %v553_v44 = vld [vmem:[%s7237_s2] sm:$0x1]  ;;  %p6130_p8 = por %p6129_p7, %p6128_p4 }
  0x67   : > { %v595_v53 = vadd.f32 %v594_v49, %v593_v50  ;;  %v554_v48 = vld [vmem:[%s7238_s3] sm:$0x1] }
  0x68   : > { %v570_v51 = vadd.f32 %v569_v45, %v568_v47  ;;  %v909_v43 = vshrl.u32 %v908_v42, 7 }
  0x69   : > { %v597_v56 = vadd.f32 %v596_v52, %v595_v53 }
  0x6a   : > { %v571_v54 = vrot.slane %v570_v51, 4  ;;  %v6582_v45 = vsub.s32 0, %v909_v43 }
  0x6b   : > { %v599_v58 = vadd.f32 %v598_v55, %v597_v56 }
  0x6c   : > { %v572_v57 = vadd.f32 %v571_v54, %v570_v51 }
  0x6d   : > { %v600_v60 = vrot.slane %v599_v58, 4 }
  0x6e   : > { %v573_v59 = vrot.slane %v572_v57, 2 }
  0x6f   : > { %v601_v62 = vadd.f32 %v600_v60, %v599_v58 }
  0x70   : > { %v574_v61 = vadd.f32 %v573_v59, %v572_v57 }
  0x71   : > { %v602_v2 = vrot.slane %v601_v62, 2 }
  0x72   : > { %v575_v63 = vrot.slane %v574_v61, 1 }
  0x73   : > { %v603_v4 = vadd.f32 %v602_v2, %v601_v62 }
  0x74   : > { %v576_v3 = vadd.f32 %v575_v63, %v574_v61 }
  0x75   : > { %v604_v6 = vrot.slane %v603_v4, 1 }
  0x76   : > { %4955 = vmatmul.mubr.msk.f32.vlgmr.msra.gmra.mrb[0].mxu0 %vm555_vm1, %v576_v3 }
  0x77   : > { %5510 = vmatpush3.bf16.msra.mxu0 %v6423_v5  ;;  %4965 = vmatprep.mubr.msk.f32.mxu0 %vm6198_vm0, %v6199_v1  ;;  %v605_v11 = vadd.f32 %v604_v6, %v603_v4  ;;  %v551_v5 = vld [vmem:[%s7240_s5 + $0x10] sm:$0xff] }
  0x78   : > { %5511 = vmatprep.subr.bf16.mxu0 %v6197_v0  ;;  %v5518_v13 = vpack.c.bf16 %v552_v12, %v551_v5 }
  0x7a   : > { %5525 = vmatpush3.bf16.msra.mxu1 %v5518_v13 }
  0x7b   : > { %5513 = vmatpush3.bf16.msra.mxu0 %v6447_v14  ;;  %5622 = vmatprep.subr.bf16.mxu1 %v6197_v0 }
  0x7c   : > { %5514 = vmatprep.subr.bf16.mxu0 %v6197_v0 }
  0x7e   : > { %4966 = vmatmul.mubr.msk.f32.vlgmr.msra.gmra.mrb[2].mxu0 %vm555_vm1, %v605_v11 }
  0x7f   : > { %5516 = vmatpush3.bf16.msra.mxu0 %v5515_v39  ;;  %4976 = vmatprep.mubr.msk.f32.mxu0 %vm6198_vm0, %v6199_v1 }
  0x80   : > { %5517 = vmatprep.subr.bf16.mxu0 %v6197_v0 }
  0x83   : > { %5519 = vmatpush3.bf16.msra.mxu0 %v5518_v13 }
  0x84   : > { %5527 = vmatprep.subr.bf16.mxu0 %v5526_v29 }
 0x149   : > { %v675_v14 = vpop.f32.mrb[0].mxu0 }
 0x14a   : > { %v679_v16 = vmul.f32 0.015625, %v675_v14  ;;  %v4956_v17 = vpop.f32.mrb[1].mxu0 }
 0x14c   : > { %4977 = vmatmul.mubr.msk.f32.vlgmr.msra.gmra.mrb[4].mxu0 %vm555_vm1, %v679_v16  ;;  %v754_v19 = vmul.f32 %v679_v16, %v679_v16 }
 0x14d   : > { %5529 = vmatpush3.bf16.msra.mxu0 %v5526_v29  ;;  %4998 = vmatprep.mubr.msk.f32.mxu0 %vm555_vm1, %v1012_v36 }
 0x14e   : > { %5531 = vmatprep.subr.bf16.mxu0 %v5530_v31 }
 0x151   : > { %v749_v18 = vpop.f32.mrb[2].mxu0  ;;  %5533 = vmatpush3.bf16.msra.mxu0 %v5530_v31 }
 0x152   : > { %v753_v21 = vmul.f32 0.015625, %v749_v18  ;;  %v4967_v22 = vpop.f32.mrb[3].mxu0  ;;  %5535 = vmatprep.subr.bf16.mxu0 %v6535_v34 }
 0x154   : > { %v755_v23 = vsub.f32 %v753_v21, %v754_v19 }
 0x156   : > { %v756_v24 = vmax.f32 %v755_v23, 0.0 }
 0x158   : > { %4988 = vmatmul.mubr.msk.f32.vlgmr.msra.gmra.mrb[0].mxu1 %vm555_vm1, %v756_v24 }
 0x159   : > { %5216 = vmatprep.mubr.msk.f32.mxu1 %vm6198_vm0, %v6199_v1 }
 0x21f   : > { %v826_v37 = vpop.f32.mrb[4].mxu0 }
 0x220   : > { %v4978_v38 = vpop.f32.mrb[5].mxu0 }
 0x22b   : > { %v899_v39 = vpop.f32.mrb[0].mxu1 }
 0x22c   : > { %v900_v40 = vadd.f32 1e-05, %v899_v39  ;;  %v4989_v41 = vpop.f32.mrb[1].mxu1 }
 0x22e   : > { %5989 = vrsqrt.f32 %v900_v40 }
 0x238   : > { %v5990_v46 = vpop.eup %5989 }
 0x239   : > { %v904_v47 = vmul.f32 %v5990_v46, %v553_v44  ;;  %v1010_v44 = vld [vmem:[#allocation3 + $0x10] sm:$0xff]  ;;  %v1011_v46 = vld [vmem:[#allocation3 + $0x18] sm:$0xff] }
 0x23b   : > { %v905_v49 = vmul.f32 %v904_v47, %v826_v37  ;;  %v911_v50 = vrot.slane %v904_v47, %v6582_v45 }
 0x23d   : > { %v906_v51 = vsub.f32 %v554_v48, %v905_v49  ;;  %v913_v52 = vmul.f32 %v911_v50, %v6429_v7  ;;  %v914_v54 = vmul.f32 %v911_v50, %v6432_v8  ;;  %v915_v55 = vmul.f32 %v911_v50, %v6435_v9 }
 0x23e   : > { %v916_v56 = vmul.f32 %v911_v50, %v6438_v10  ;;  %v917_v57 = vmul.f32 %v911_v50, %v6450_v15  ;;  %v918_v58 = vmul.f32 %v911_v50, %v6460_v20  ;;  %v919_v59 = vmul.f32 %v911_v50, %v6477_v28 }
 0x23f   : > { %v925_v53 = vrot.slane %v906_v51, %v6582_v45  ;;  %v920_v60 = vmul.f32 %v911_v50, %v6487_v35  ;;  %v5538_v51 = vpack.c.bf16 %v1011_v46, %v1010_v44  ;;  %v2043_v46 = vld [vmem:[#allocation3 + $0xe0] sm:$0xff] }
 0x241   : > { %v927_v61 = vadd.f32 %v925_v53, %v913_v52  ;;  %v928_v62 = vadd.f32 %v925_v53, %v914_v54  ;;  %v929_v63 = vadd.f32 %v925_v53, %v915_v55  ;;  %v930_v7 = vadd.f32 %v925_v53, %v916_v56  ;;  %v1293_v54 = vld [vmem:[#allocation3 + $0x48] sm:$0xff] }
 0x242   : > { %v931_v2 = vadd.f32 %v925_v53, %v917_v57  ;;  %v932_v3 = vadd.f32 %v925_v53, %v918_v58  ;;  %v6597_v4 = vadd.f32 %v925_v53, %v919_v59  ;;  %v6599_v8 = vadd.f32 %v925_v53, %v920_v60  ;;  %v1292_v53 = vld [vmem:[#allocation3 + $0x40] sm:$0xff] }
 0x243   : > { %v4453_v9 = vmul.f32 -1.442695, %v927_v61  ;;  %v4454_v10 = vmul.f32 -1.442695, %v928_v62  ;;  %v4455_v6 = vmul.f32 -1.442695, %v929_v63  ;;  %v5542_v56 = vpack.c.bf16 %v1293_v54, %v1292_v53 }
 0x244   : > { %v4456_v15 = vmul.f32 -1.442695, %v930_v7  ;;  %v4457_v20 = vmul.f32 -1.442695, %v931_v2  ;;  %v4458_v28 = vmul.f32 -1.442695, %v932_v3 }
 0x245   : > { %5991 = vpow2.f32 %v4453_v9  ;;  %v4459_v35 = vmul.f32 -1.442695, %v6597_v4  ;;  %v4460_v11 = vmul.f32 -1.442695, %v6599_v8  ;;  %v6638_v60 = vld [vmem:[#allocation2] sm:$0xff]  ;;  %v2194_v54 = vld [vmem:[#allocation3 + $0x108] sm:$0xff] }
 0x246   : > { %5993 = vpow2.f32 %v4454_v10  ;;  %v2193_v53 = vld [vmem:[#allocation3 + $0x100] sm:$0xff] }
 0x247   : > { %5995 = vpow2.f32 %v4455_v6 }
 0x248   : > { %5997 = vpow2.f32 %v4456_v15 }
 0x249   : > { %5999 = vpow2.f32 %v4457_v20 }
 0x24a   : > { %6001 = vpow2.f32 %v4458_v28  ;;  %v6667_v28 = vld [vmem:[#allocation2 + $0x2] sm:$0xff] }
 0x24b   : > { %6003 = vpow2.f32 %v4459_v35 }
 0x24c   : > { %6005 = vpow2.f32 %v4460_v11  ;;  %v1444_v11 = vld [vmem:[#allocation3 + $0x70] sm:$0xff] }
 0x24f   : > { %v5992_v5 = vpop.eup %5991 }
 0x250   : > { %v5994_v12 = vpop.eup %5993  ;;  %v959_v13 = vadd.f32 1.0, %v5992_v5  ;;  %v1445_v5 = vld [vmem:[#allocation3 + $0x78] sm:$0xff] }
 0x251   : > { %v5996_v14 = vpop.eup %5995  ;;  %v960_v16 = vadd.f32 1.0, %v5994_v12  ;;  %v5554_v12 = vpack.c.bf16 %v1445_v5, %v1444_v11  ;;  %v2358_v11 = vld [vmem:[%s7245_s10 + $0x8] sm:$0xff] }
 0x252   : > { %v5998_v17 = vpop.eup %5997  ;;  %6007 = vrcp.f32 %v959_v13  ;;  %v961_v18 = vadd.f32 1.0, %v5996_v14  ;;  %v1592_v14 = vld [vmem:[#allocation3 + $0x80] sm:$0xff] }
 0x253   : > { %v6000_v19 = vpop.eup %5999  ;;  %6009 = vrcp.f32 %v960_v16  ;;  %v962_v21 = vadd.f32 1.0, %v5998_v17  ;;  %v1593_v16 = vld [vmem:[#allocation3 + $0x88] sm:$0xff] }
 0x254   : > { %v6002_v22 = vpop.eup %6001  ;;  %6011 = vrcp.f32 %v961_v18  ;;  %v963_v23 = vadd.f32 1.0, %v6000_v19  ;;  %v5558_v18 = vpack.c.bf16 %v1593_v16, %v1592_v14 }
 0x255   : > { %v6004_v24 = vpop.eup %6003  ;;  %6013 = vrcp.f32 %v962_v21  ;;  %v964_v25 = vadd.f32 1.0, %v6002_v22 }
 0x256   : > { %v6006_v26 = vpop.eup %6005  ;;  %6015 = vrcp.f32 %v963_v23  ;;  %v965_v27 = vadd.f32 1.0, %v6004_v24 }
 0x257   : > { %6017 = vrcp.f32 %v964_v25  ;;  %v966_v29 = vadd.f32 1.0, %v6006_v26  ;;  %v1594_v25 = vld [vmem:[#allocation3 + $0x90] sm:$0xff]  ;;  %v1595_v26 = vld [vmem:[#allocation3 + $0x98] sm:$0xff] }
 0x258   : > { %6019 = vrcp.f32 %v965_v27  ;;  %v5562_v27 = vpack.c.bf16 %v1595_v26, %v1594_v25 }
 0x259   : > { %6021 = vrcp.f32 %v966_v29  ;;  %v1742_v29 = vld [vmem:[#allocation3 + $0xa0] sm:$0xff] }
 0x25c   : > { %v6008_v30 = vpop.eup %6007 }
 0x25d   : > { %v6010_v31 = vpop.eup %6009  ;;  %v983_v32 = vmul.f32 %v6008_v30, %v927_v61  ;;  %v1743_v30 = vld [vmem:[#allocation3 + $0xa8] sm:$0xff] }
 0x25e   : > { %v6012_v33 = vpop.eup %6011  ;;  %v984_v36 = vmul.f32 %v6010_v31, %v928_v62  ;;  %v1294_v62 = vld [vmem:[#allocation3 + $0x50] sm:$0xff]  ;;  %v5566_v31 = vpack.c.bf16 %v1743_v30, %v1742_v29 }
 0x25f   : > { %v6014_v37 = vpop.eup %6013  ;;  %992 = vst.msk [vmem:[#allocation2 + $0x11] sm:$0xff] %vm555_vm1, %v983_v32  ;;  %v985_v38 = vmul.f32 %v6012_v33, %v929_v63  ;;  %v1295_v63 = vld [vmem:[#allocation3 + $0x58] sm:$0xff]  ;;  %v1744_v33 = vld [vmem:[#allocation3 + $0xb0] sm:$0xff] }
 0x260   : > { %v6016_v39 = vpop.eup %6015  ;;  %993 = vst.msk [vmem:[#allocation2 + $0x21] sm:$0xff] %vm555_vm1, %v984_v36  ;;  %v986_v40 = vmul.f32 %v6014_v37, %v930_v7  ;;  %v5546_v7 = vpack.c.bf16 %v1295_v63, %v1294_v62  ;;  %v1745_v36 = vld [vmem:[#allocation3 + $0xb8] sm:$0xff]  ;;  %v1891_v62 = vld [vmem:[#allocation2 + $0x90] sm:$0xff] }
 0x261   : > { %v6018_v41 = vpop.eup %6017  ;;  %994 = vst.msk [vmem:[#allocation2 + $0x31] sm:$0xff] %vm555_vm1, %v985_v38  ;;  %v987_v42 = vmul.f32 %v6016_v39, %v931_v2  ;;  %v5570_v37 = vpack.c.bf16 %v1745_v36, %v1744_v33  ;;  %v1893_v38 = vld [vmem:[#allocation3 + $0xc0] sm:$0xff]  ;;  %v1894_v39 = vld [vmem:[#allocation3 + $0xc8] sm:$0xff]  ;;  %v2195_v63 = vld [vmem:[#allocation3 + $0x110] sm:$0xff] }
 0x262   : > { %v6020_v43 = vpop.eup %6019  ;;  %995 = vst.msk [vmem:[#allocation2 + $0x41] sm:$0xff] %vm555_vm1, %v986_v40  ;;  %v988_v47 = vmul.f32 %v6018_v41, %v932_v3  ;;  %v1442_v3 = vld [vmem:[#allocation3 + $0x60] sm:$0xff]  ;;  %v5574_v40 = vpack.c.bf16 %v1894_v39, %v1893_v38 }
 0x263   : > { %v6022_v48 = vpop.eup %6021  ;;  %996 = vst.msk [vmem:[#allocation2 + $0x51] sm:$0xff] %vm555_vm1, %v987_v42  ;;  %v989_v49 = vmul.f32 %v6020_v43, %v6597_v4  ;;  %v1443_v4 = vld [vmem:[#allocation3 + $0x68] sm:$0xff]  ;;  %v1895_v42 = vld [vmem:[#allocation3 + $0xd0] sm:$0xff]  ;;  %v1896_v43 = vld [vmem:[#allocation3 + $0xd8] sm:$0xff] }
 0x264   : > { %997 = vst.msk [vmem:[#allocation2 + $0x61] sm:$0xff] %vm555_vm1, %v988_v47  ;;  %v990_v50 = vmul.f32 %v6022_v48, %v6599_v8  ;;  %v5550_v9 = vpack.c.bf16 %v1443_v4, %v1442_v3  ;;  %v5578_v44 = vpack.c.bf16 %v1896_v43, %v1895_v42  ;;  %v2044_v47 = vld [vmem:[#allocation3 + $0xe8] sm:$0xff]  ;;  %v2352_v3 = vld [vmem:[%s7244_s9 + $0x18] sm:$0xff] }
 0x265   : > { %998 = vst.msk [vmem:[#allocation2 + $0x71] sm:$0xff] %vm555_vm1, %v989_v49  ;;  %v5582_v48 = vpack.c.bf16 %v2044_v47, %v2043_v46 }
 0x266   : > { %v6612_v52 = vld [vmem:[#allocation2 + $0x11] sm:$0xff]  ;;  %999 = vst.msk [vmem:[#allocation2 + $0x81] sm:$0xff] %vm555_vm1, %v990_v50 }
 0x267   : > { %4999 = vmatmul.mubr.msk.f32.vlgmr.msra.gmra.mrb[6].mxu0 %vm555_vm1, %v6612_v52  ;;  %v6617_v55 = vld [vmem:[#allocation2 + $0x21] sm:$0xff]  ;;  %v1001_v2 = vld [vmem:[#allocation2 + $0x10] sm:$0xff] }
 0x268   : > { %5537 = vmatpush3.bf16.msra.mxu0 %v6535_v34  ;;  %5001 = vmatprep.mubr.msk.f32.mxu0 %vm555_vm1, %v6617_v55  ;;  %v6622_v57 = vld [vmem:[#allocation2 + $0x31] sm:$0xff]  ;;  %v6647_v8 = vld [vmem:[#allocation2 + $0x20] sm:$0xff] }
 0x269   : > { %5539 = vmatprep.subr.bf16.mxu0 %v5538_v51  ;;  %v6626_v58 = vld [vmem:[#allocation2 + $0x41] sm:$0xff]  ;;  %v6651_v10 = vld [vmem:[#allocation2 + $0x30] sm:$0xff] }
 0x26a   : > { %v6630_v59 = vld [vmem:[#allocation2 + $0x51] sm:$0xff]  ;;  %v6655_v6 = vld [vmem:[#allocation2 + $0x40] sm:$0xff] }
 0x26b   : > { %5002 = vmatmul.mubr.msk.f32.gmra.mrb[8].mxu0 %vm555_vm1, %v6622_v57  ;;  %v6634_v34 = vld [vmem:[#allocation2 + $0x61] sm:$0xff]  ;;  %v6659_v15 = vld [vmem:[#allocation2 + $0x50] sm:$0xff] }
 0x26c   : > { %5004 = vmatprep.mubr.msk.f32.mxu0 %vm555_vm1, %v6626_v58  ;;  %5541 = vmatpush3.bf16.msra.mxu0 %v5538_v51  ;;  %v6640_v61 = vld [vmem:[#allocation2 + $0x71] sm:$0xff]  ;;  %v6663_v20 = vld [vmem:[#allocation2 + $0x60] sm:$0xff] }
 0x26d   : > { %5543 = vmatprep.subr.bf16.mxu0 %v5542_v56  ;;  %v6669_v35 = vld [vmem:[#allocation2 + $0x70] sm:$0xff]  ;;  %v6676_v17 = vld [vmem:[#allocation2 + $0x22] sm:$0xff]  ;;  %v2046_v51 = vld [vmem:[#allocation3 + $0xf8] sm:$0xff] }
 0x26e   : > { %v1284_v13 = vld [vmem:[#allocation2 + $0x12] sm:$0xff]  ;;  %v6684_v21 = vld [vmem:[#allocation2 + $0x42] sm:$0xff] }
 0x26f   : > { %5005 = vmatmul.mubr.msk.f32.gmra.mrb[10].mxu0 %vm555_vm1, %v6630_v59  ;;  %v6680_v19 = vld [vmem:[#allocation2 + $0x32] sm:$0xff]  ;;  %v6692_v23 = vld [vmem:[#allocation2 + $0x62] sm:$0xff] }
 0x270   : > { %5007 = vmatprep.mubr.msk.f32.mxu0 %vm555_vm1, %v6634_v34  ;;  %v6688_v22 = vld [vmem:[#allocation2 + $0x52] sm:$0xff]  ;;  %v1440_v32 = vld [vmem:[#allocation2 + $0x80] sm:$0xff] }
 0x271   : > { %v6696_v24 = vld [vmem:[#allocation2 + $0x72] sm:$0xff]  ;;  %v1590_v41 = vld [vmem:[#allocation2 + $0x81] sm:$0xff] }
 0x272   : > { %v1740_v49 = vld [vmem:[#allocation2 + $0x82] sm:$0xff]  ;;  %v2045_v50 = vld [vmem:[#allocation3 + $0xf0] sm:$0xff] }
 0x273   : > { %5008 = vmatmul.mubr.msk.f32.gmra.mrb[12].mxu0 %vm555_vm1, %v6640_v61 }
 0x274   : > { %5018 = vmatprep.mubr.msk.f32.mxu0 %vm555_vm1, %v6638_v60 }
 0x277   : > { %5019 = vmatmul.mubr.msk.f32.vlgmr.msra.gmra.mrb[6].mxu0 %vm555_vm1, %v1001_v2 }
 0x278   : > { %5545 = vmatpush3.bf16.msra.mxu0 %v5542_v56  ;;  %5021 = vmatprep.mubr.msk.f32.mxu0 %vm555_vm1, %v6647_v8  ;;  %v5590_v56 = vpack.c.bf16 %v2194_v54, %v2193_v53 }
 0x279   : > { %5547 = vmatprep.subr.bf16.mxu0 %v5546_v7 }
 0x27b   : > { %5022 = vmatmul.mubr.msk.f32.gmra.mrb[8].mxu0 %vm555_vm1, %v6651_v10 }
 0x27c   : > { %5024 = vmatprep.mubr.msk.f32.mxu0 %vm555_vm1, %v6655_v6  ;;  %5549 = vmatpush3.bf16.msra.mxu0 %v5546_v7  ;;  %v2196_v7 = vld [vmem:[#allocation3 + $0x118] sm:$0xff] }
 0x27d   : > { %5551 = vmatprep.subr.bf16.mxu0 %v5550_v9 }
 0x27f   : > { %5025 = vmatmul.mubr.msk.f32.gmra.mrb[10].mxu0 %vm555_vm1, %v6659_v15 }
 0x280   : > { %5027 = vmatprep.mubr.msk.f32.mxu0 %vm555_vm1, %v6663_v20 }
 0x283   : > { %5028 = vmatmul.mubr.msk.f32.gmra.mrb[12].mxu0 %vm555_vm1, %v6669_v35 }
 0x284   : > { %5038 = vmatprep.mubr.msk.f32.mxu0 %vm555_vm1, %v6667_v28 }
 0x287   : > { %5039 = vmatmul.mubr.msk.f32.vlgmr.msra.gmra.mrb[6].mxu0 %vm555_vm1, %v1284_v13 }
 0x288   : > { %5553 = vmatpush3.bf16.msra.mxu0 %v5550_v9  ;;  %5041 = vmatprep.mubr.msk.f32.mxu0 %vm555_vm1, %v6676_v17  ;;  %v2354_v9 = vld [vmem:[%s7244_s9 + $0x28] sm:$0xff] }
 0x289   : > { %5555 = vmatprep.subr.bf16.mxu0 %v5554_v12 }
 0x28b   : > { %5042 = vmatmul.mubr.msk.f32.gmra.mrb[8].mxu0 %vm555_vm1, %v6680_v19 }
 0x28c   : > { %5044 = vmatprep.mubr.msk.f32.mxu0 %vm555_vm1, %v6684_v21  ;;  %5557 = vmatpush3.bf16.msra.mxu0 %v5554_v12  ;;  %v4533_v12 = vld [vmem:[%s509_s24] ss:$0 sm:$0xff]  ;;  %s7281_s24 = smov %s7280_s29 }
 0x28d   : > { %5559 = vmatprep.subr.bf16.mxu0 %v5558_v18 }
 0x28f   : > { %5045 = vmatmul.mubr.msk.f32.gmra.mrb[10].mxu0 %vm555_vm1, %v6688_v22 }
 0x290   : > { %5047 = vmatprep.mubr.msk.f32.mxu0 %vm555_vm1, %v6692_v23 }
 0x293   : > { %5048 = vmatmul.mubr.msk.f32.gmra.mrb[12].mxu0 %vm555_vm1, %v6696_v24 }
 0x294   : > { %5058 = vmatprep.mubr.msk.f32.mxu0 %vm555_vm1, %v1001_v2  ;;  %v5594_v2 = vpack.c.bf16 %v2196_v7, %v2195_v63 }
 0x297   : > { %5059 = vmatmul.mubr.msk.f32.vlgmr.msra.gmra.mrb[6].mxu0 %vm555_vm1, %v6647_v8 }
 0x298   : > { %5561 = vmatpush3.bf16.msra.mxu0 %v5558_v18  ;;  %5061 = vmatprep.mubr.msk.f32.mxu0 %vm555_vm1, %v6651_v10 }
 0x299   : > { %5563 = vmatprep.subr.bf16.mxu0 %v5562_v27 }
 0x29b   : > { %5062 = vmatmul.mubr.msk.f32.gmra.mrb[8].mxu0 %vm555_vm1, %v6655_v6 }
 0x29c   : > { %5064 = vmatprep.mubr.msk.f32.mxu0 %vm555_vm1, %v6659_v15  ;;  %5565 = vmatpush3.bf16.msra.mxu0 %v5562_v27 }
 0x29d   : > { %5567 = vmatprep.subr.bf16.mxu0 %v5566_v31 }
 0x29f   : > { %5065 = vmatmul.mubr.msk.f32.gmra.mrb[10].mxu0 %vm555_vm1, %v6663_v20 }
 0x2a0   : > { %5067 = vmatprep.mubr.msk.f32.mxu0 %vm555_vm1, %v6669_v35 }
 0x2a3   : > { %5068 = vmatmul.mubr.msk.f32.gmra.mrb[12].mxu0 %vm555_vm1, %v1440_v32 }
 0x2a4   : > { %5078 = vmatprep.mubr.msk.f32.mxu0 %vm555_vm1, %v6612_v52  ;;  %v5586_v52 = vpack.c.bf16 %v2046_v51, %v2045_v50 }
 0x2a7   : > { %5079 = vmatmul.mubr.msk.f32.vlgmr.msra.gmra.mrb[6].mxu0 %vm555_vm1, %v6617_v55 }
 0x2a8   : > { %5569 = vmatpush3.bf16.msra.mxu0 %v5566_v31  ;;  %5081 = vmatprep.mubr.msk.f32.mxu0 %vm555_vm1, %v6622_v57 }
 0x2a9   : > { %5571 = vmatprep.subr.bf16.mxu0 %v5570_v37 }
 0x2ab   : > { %5082 = vmatmul.mubr.msk.f32.gmra.mrb[8].mxu0 %vm555_vm1, %v6626_v58 }
 0x2ac   : > { %5084 = vmatprep.mubr.msk.f32.mxu0 %vm555_vm1, %v6630_v59  ;;  %5573 = vmatpush3.bf16.msra.mxu0 %v5570_v37 }
 0x2ad   : > { %5575 = vmatprep.subr.bf16.mxu0 %v5574_v40 }
 0x2af   : > { %5085 = vmatmul.mubr.msk.f32.gmra.mrb[10].mxu0 %vm555_vm1, %v6634_v34 }
 0x2b0   : > { %5087 = vmatprep.mubr.msk.f32.mxu0 %vm555_vm1, %v6640_v61 }
 0x2b3   : > { %5088 = vmatmul.mubr.msk.f32.gmra.mrb[12].mxu0 %vm555_vm1, %v1590_v41 }
 0x2b4   : > { %5098 = vmatprep.mubr.msk.f32.mxu0 %vm555_vm1, %v1284_v13 }
 0x2b7   : > { %5099 = vmatmul.mubr.msk.f32.vlgmr.msra.gmra.mrb[6].mxu0 %vm555_vm1, %v6676_v17 }
 0x2b8   : > { %5577 = vmatpush3.bf16.msra.mxu0 %v5574_v40  ;;  %5101 = vmatprep.mubr.msk.f32.mxu0 %vm555_vm1, %v6680_v19 }
 0x2b9   : > { %5579 = vmatprep.subr.bf16.mxu0 %v5578_v44 }
 0x2bb   : > { %5102 = vmatmul.mubr.msk.f32.gmra.mrb[8].mxu0 %vm555_vm1, %v6684_v21 }
 0x2bc   : > { %5104 = vmatprep.mubr.msk.f32.mxu0 %vm555_vm1, %v6688_v22  ;;  %5581 = vmatpush3.bf16.msra.mxu0 %v5578_v44 }
 0x2bd   : > { %5583 = vmatprep.subr.bf16.mxu0 %v5582_v48 }
 0x2bf   : > { %5105 = vmatmul.mubr.msk.f32.gmra.mrb[10].mxu0 %vm555_vm1, %v6692_v23 }
 0x2c0   : > { %5107 = vmatprep.mubr.msk.f32.mxu0 %vm555_vm1, %v6696_v24 }
 0x2c3   : > { %5108 = vmatmul.mubr.msk.f32.gmra.mrb[12].mxu0 %vm555_vm1, %v1740_v49 }
 0x2c4   : > { %5118 = vmatprep.mubr.msk.f32.mxu0 %vm555_vm1, %v6647_v8  ;;  %v2353_v8 = vld [vmem:[%s7244_s9 + $0x20] sm:$0xff] }
 0x2c7   : > { %5119 = vmatmul.mubr.msk.f32.vlgmr.msra.gmra.mrb[6].mxu0 %vm555_vm1, %v6651_v10  ;;  %v6814_v10 = vpack.c.bf16 %v2354_v9, %v2353_v8 }
 0x2c8   : > { %5585 = vmatpush3.bf16.msra.mxu0 %v5582_v48  ;;  %5121 = vmatprep.mubr.msk.f32.mxu0 %vm555_vm1, %v6655_v6  ;;  %v2355_v6 = vld [vmem:[%s7244_s9 + $0x30] sm:$0xff] }
 0x2c9   : > { %5587 = vmatprep.subr.bf16.mxu0 %v5586_v52 }
 0x2cb   : > { %5122 = vmatmul.mubr.msk.f32.gmra.mrb[8].mxu0 %vm555_vm1, %v6659_v15  ;;  %v2356_v15 = vld [vmem:[%s7244_s9 + $0x38] sm:$0xff] }
 0x2cc   : > { %5124 = vmatprep.mubr.msk.f32.mxu0 %vm555_vm1, %v6663_v20  ;;  %5589 = vmatpush3.bf16.msra.mxu0 %v5586_v52  ;;  %v6823_v20 = vpack.c.bf16 %v2356_v15, %v2355_v6 }
 0x2cd   : > { %5591 = vmatprep.subr.bf16.mxu0 %v5590_v56 }
 0x2cf   : > { %5125 = vmatmul.mubr.msk.f32.gmra.mrb[10].mxu0 %vm555_vm1, %v6669_v35  ;;  %v2357_v35 = vld [vmem:[%s7245_s10] sm:$0xff] }
 0x2d0   : > { %5127 = vmatprep.mubr.msk.f32.mxu0 %vm555_vm1, %v1440_v32  ;;  %v6834_v5 = vpack.c.bf16 %v2358_v11, %v2357_v35 }
 0x2d2   : > { %5624 = vmatpush3.bf16.msra.mxu1 %v6834_v5 }
 0x2d3   : > { %5128 = vmatmul.mubr.msk.f32.gmra.mrb[12].mxu0 %vm555_vm1, %v1891_v62  ;;  %5625 = vmatprep.subr.bf16.mxu1 %v6197_v0 }
 0x2d4   : > { %5138 = vmatprep.mubr.msk.f32.mxu0 %vm555_vm1, %v6617_v55  ;;  %v2041_v55 = vld [vmem:[#allocation2 + $0x91] sm:$0xff] }
 0x2d7   : > { %5139 = vmatmul.mubr.msk.f32.vlgmr.msra.gmra.mrb[6].mxu0 %vm555_vm1, %v6622_v57  ;;  %v2191_v57 = vld [vmem:[#allocation2 + $0x92] sm:$0xff] }
 0x2d8   : > { %5593 = vmatpush3.bf16.msra.mxu0 %v5590_v56  ;;  %5141 = vmatprep.mubr.msk.f32.mxu0 %vm555_vm1, %v6626_v58  ;;  %v2349_v58 = vld [vmem:[%s7244_s9] sm:$0xff] }
 0x2d9   : > { %5595 = vmatprep.subr.bf16.mxu0 %v5594_v2 }
 0x2db   : > { %5142 = vmatmul.mubr.msk.f32.gmra.mrb[8].mxu0 %vm555_vm1, %v6630_v59  ;;  %v2350_v59 = vld [vmem:[%s7244_s9 + $0x8] sm:$0xff] }
 0x2dc   : > { %5144 = vmatprep.mubr.msk.f32.mxu0 %vm555_vm1, %v6634_v34  ;;  %5597 = vmatpush3.bf16.msra.mxu0 %v5594_v2  ;;  %v6794_v34 = vpack.c.bf16 %v2350_v59, %v2349_v58 }
 0x2dd   : > { %5598 = vmatprep.subr.bf16.mxu0 %v6197_v0 }
 0x2df   : > { %5145 = vmatmul.mubr.msk.f32.gmra.mrb[10].mxu0 %vm555_vm1, %v6640_v61  ;;  %v2351_v61 = vld [vmem:[%s7244_s9 + $0x10] sm:$0xff] }
 0x2e0   : > { %5147 = vmatprep.mubr.msk.f32.mxu0 %vm555_vm1, %v1590_v41  ;;  %v6804_v4 = vpack.c.bf16 %v2352_v3, %v2351_v61 }
 0x2e3   : > { %5148 = vmatmul.mubr.msk.f32.gmra.mrb[12].mxu0 %vm555_vm1, %v2041_v55 }
 0x2e4   : > { %5158 = vmatprep.mubr.msk.f32.mxu0 %vm555_vm1, %v6676_v17 }
 0x2e7   : > { %5159 = vmatmul.mubr.msk.f32.vlgmr.msra.gmra.mrb[6].mxu0 %vm555_vm1, %v6680_v19 }
 0x2e8   : > { %5161 = vmatprep.mubr.msk.f32.mxu0 %vm555_vm1, %v6684_v21  ;;  %5600 = vmatpush3.bf16.msra.mxu0 %v6794_v34 }
 0x2e9   : > { %5601 = vmatprep.subr.bf16.mxu0 %v6197_v0 }
 0x2eb   : > { %5162 = vmatmul.mubr.msk.f32.gmra.mrb[8].mxu0 %vm555_vm1, %v6688_v22 }
 0x2ec   : > { %5164 = vmatprep.mubr.msk.f32.mxu0 %vm555_vm1, %v6692_v23  ;;  %5603 = vmatpush3.bf16.msra.mxu0 %v6804_v4 }
 0x2ed   : > { %5604 = vmatprep.subr.bf16.mxu0 %v6197_v0 }
 0x2ef   : > { %5165 = vmatmul.mubr.msk.f32.gmra.mrb[10].mxu0 %vm555_vm1, %v6696_v24 }
 0x2f0   : > { %5167 = vmatprep.mubr.msk.f32.mxu0 %vm555_vm1, %v1740_v49  ;;  %5606 = vmatpush3.bf16.msra.mxu0 %v6814_v10 }
 0x2f1   : > { %5607 = vmatprep.subr.bf16.mxu0 %v6197_v0 }
 0x2f3   : > { %5168 = vmatmul.mubr.msk.f32.gmra.mrb[12].mxu0 %vm555_vm1, %v2191_v57 }
 0x2f4   : > { %5186 = vmatprep.mubr.msk.f32.mxu0 %vm6198_vm0, %v6199_v1  ;;  %5609 = vmatpush3.bf16.msra.mxu0 %v6823_v20 }
 0x2f5   : > { %5610 = vmatprep.subr.bf16.mxu0 %v6197_v0 }
 0x3ba   : > { %v5160_v13 = vpop.f32.mrb[6].mxu0 }
 0x3bb   : > { %v6842_v14 = vadd.f32 %v5160_v13, %v4533_v12  ;;  %v2287_v16 = vpop.f32.mrb[7].mxu0 }
 0x3bc   : > { %v6844_v17 = vadd.f32 %v4533_v12, %v2287_v16 }
 0x3bd   : > { %v2385_v18 = vmul.f32 %v6842_v14, %v6842_v14  ;;  %v2364_v19 = vsel %vm510_vm2, %v6842_v14, 0.0 }
 0x3be   : > { %v2363_v21 = vsel %vm510_vm2, %v6844_v17, 0.0  ;;  %v2384_v22 = vmul.f32 %v6844_v17, %v6844_v17  ;;  %v5163_v23 = vpop.f32.mrb[8].mxu0 }
 0x3bf   : > { %v6854_v24 = vadd.f32 %v5163_v23, %v4533_v12  ;;  %v2297_v25 = vpop.f32.mrb[9].mxu0  ;;  %v2393_v26 = vsel %vm510_vm2, %v2385_v18, 0.0  ;;  %v2365_v30 = vadd.f32 %v2364_v19, %v2363_v21 }
 0x3c0   : > { %v2392_v27 = vsel %vm510_vm2, %v2384_v22, 0.0  ;;  %v6858_v29 = vadd.f32 %v4533_v12, %v2297_v25 }
 0x3c1   : > { %v2387_v31 = vmul.f32 %v6854_v24, %v6854_v24  ;;  %v2394_v37 = vadd.f32 %v2393_v26, %v2392_v27  ;;  %v2368_v41 = vsel %vm510_vm2, %v6854_v24, 0.0 }
 0x3c2   : > { %v2366_v32 = vsel %vm510_vm2, %v6858_v29, 0.0  ;;  %v2386_v33 = vmul.f32 %v6858_v29, %v6858_v29  ;;  %v5166_v36 = vpop.f32.mrb[10].mxu0 }
 0x3c3   : > { %v2367_v38 = vadd.f32 %v2366_v32, %v2365_v30  ;;  %v6866_v39 = vadd.f32 %v5166_v36, %v4533_v12  ;;  %v2307_v40 = vpop.f32.mrb[11].mxu0  ;;  %v2397_v47 = vsel %vm510_vm2, %v2387_v31, 0.0 }
 0x3c4   : > { %v2395_v42 = vsel %vm510_vm2, %v2386_v33, 0.0  ;;  %v6871_v43 = vadd.f32 %v4533_v12, %v2307_v40 }
 0x3c5   : > { %v2396_v44 = vadd.f32 %v2395_v42, %v2394_v37  ;;  %v2369_v46 = vadd.f32 %v2368_v41, %v2367_v38  ;;  %v2389_v48 = vmul.f32 %v6866_v39, %v6866_v39  ;;  %v2372_v56 = vsel %vm510_vm2, %v6866_v39, 0.0 }
 0x3c6   : > { %v2370_v49 = vsel %vm510_vm2, %v6871_v43, 0.0  ;;  %v2388_v50 = vmul.f32 %v6871_v43, %v6871_v43  ;;  %v5169_v51 = vpop.f32.mrb[12].mxu0 }
 0x3c7   : > { %v2371_v52 = vadd.f32 %v2370_v49, %v2369_v46  ;;  %v2398_v53 = vadd.f32 %v2397_v47, %v2396_v44  ;;  %v2317_v54 = vpop.f32.mrb[13].mxu0  ;;  %v6883_v63 = vadd.f32 %v5169_v51, %v4533_v12  ;;  %v2401_v57 = vsel %vm510_vm2, %v2389_v48, 0.0  ;;  %v2831_v44 = vld [vmem:[#allocation6 + $0x40] sm:$0xff]  ;;  %v2832_v46 = vld [vmem:[#allocation6 + $0x48] sm:$0xff]  ;;  %v2834_v48 = vld [vmem:[#allocation6 + $0x58] sm:$0xff] }
 0x3c8   : > { %v2399_v62 = vsel %vm510_vm2, %v2388_v50, 0.0  ;;  %v6885_v7 = vadd.f32 %v4533_v12, %v2317_v54  ;;  %v5634_v47 = vpack.c.bf16 %v2832_v46, %v2831_v44  ;;  %v2837_v51 = vld [vmem:[#allocation6 + $0x70] sm:$0xff] }
 0x3c9   : > { %v2400_v2 = vadd.f32 %v2399_v62, %v2398_v53  ;;  %v2373_v55 = vadd.f32 %v2372_v56, %v2371_v52  ;;  %v2376_v8 = vsel %vm510_vm2, %v6883_v63, 0.0  ;;  %v2391_v9 = vmul.f32 %v6883_v63, %v6883_v63  ;;  %v2838_v52 = vld [vmem:[#allocation6 + $0x78] sm:$0xff]  ;;  %v2822_v53 = vld [vmem:[#allocation2 + $0x1] sm:$0xff] }
 0x3ca   : > { %v2374_v58 = vsel %vm510_vm2, %v6885_v7, 0.0  ;;  %v2390_v59 = vmul.f32 %v6885_v7, %v6885_v7  ;;  %v5646_v54 = vpack.c.bf16 %v2838_v52, %v2837_v51  ;;  %v2814_v56 = vld [vmem:[#allocation6] sm:$0xff]  ;;  %v2815_v62 = vld [vmem:[#allocation6 + $0x8] sm:$0xff] }
 0x3cb   : > { %v2375_v61 = vadd.f32 %v2374_v58, %v2373_v55  ;;  %v2402_v3 = vadd.f32 %v2401_v57, %v2400_v2  ;;  %v2405_v12 = vsel %vm510_vm2, %v2391_v9, 0.0  ;;  %v6923_v2 = vpack.c.bf16 %v2815_v62, %v2814_v56 }
 0x3cc   : > { %v2403_v6 = vsel %vm510_vm2, %v2390_v59, 0.0 }
 0x3cd   : > { %v2377_v15 = vadd.f32 %v2376_v8, %v2375_v61  ;;  %v2404_v35 = vadd.f32 %v2403_v6, %v2402_v3  ;;  %v2361_v3 = vld [vmem:[%s7242_s7] sm:$0x1] }
 0x3ce   : > { %v2362_v6 = vld [vmem:[%s7243_s8] sm:$0x1] }
 0x3cf   : > { %v2378_v11 = vrot.slane %v2377_v15, 4  ;;  %v2406_v16 = vadd.f32 %v2405_v12, %v2404_v35 }
 0x3d1   : > { %v2379_v13 = vadd.f32 %v2378_v11, %v2377_v15  ;;  %v2407_v21 = vrot.slane %v2406_v16, 4 }
 0x3d3   : > { %v2380_v18 = vrot.slane %v2379_v13, 2  ;;  %v2408_v25 = vadd.f32 %v2407_v21, %v2406_v16 }
 0x3d5   : > { %v2381_v19 = vadd.f32 %v2380_v18, %v2379_v13  ;;  %v2409_v26 = vrot.slane %v2408_v25, 2 }
 0x3d7   : > { %v2382_v22 = vrot.slane %v2381_v19, 1  ;;  %v2410_v27 = vadd.f32 %v2409_v26, %v2408_v25 }
 0x3d9   : > { %v2383_v23 = vadd.f32 %v2382_v22, %v2381_v19  ;;  %v2411_v30 = vrot.slane %v2410_v27, 1 }
 0x3db   : > { %5187 = vmatmul.mubr.msk.f32.vlgmr.msra.gmra.mrb[14].mxu0 %vm510_vm2, %v2383_v23  ;;  %v2412_v31 = vadd.f32 %v2411_v30, %v2410_v27 }
 0x3dc   : > { %5612 = vmatpush3.bf16.msra.mxu0 %v6794_v34  ;;  %5205 = vmatprep.mubr.msk.f32.mxu0 %vm6198_vm0, %v6199_v1  ;;  %v2359_v34 = vld [vmem:[%s7245_s10 + $0x10] sm:$0xff] }
 0x3dd   : > { %5613 = vmatprep.subr.bf16.mxu0 %v6197_v0 }
 0x3e0   : > { %5615 = vmatpush3.bf16.msra.mxu0 %v6804_v4  ;;  %v2360_v4 = vld [vmem:[%s7245_s10 + $0x18] sm:$0xff] }
 0x3e1   : > { %5616 = vmatprep.subr.bf16.mxu0 %v6197_v0  ;;  %v5626_v32 = vpack.c.bf16 %v2360_v4, %v2359_v34 }
 0x3e3   : > { %5627 = vmatpush3.bf16.msra.mxu1 %v5626_v32 }
 0x3e4   : > { %5618 = vmatpush3.bf16.msra.mxu0 %v6814_v10  ;;  %5628 = vmatprep.subr.bf16.mxu1 %v6197_v0 }
 0x3e5   : > { %5619 = vmatprep.subr.bf16.mxu0 %v6197_v0 }
 0x3e8   : > { %5621 = vmatpush3.bf16.msra.mxu0 %v6823_v20 }
 0x3eb   : > { %5206 = vmatmul.mubr.msk.f32.vlgmr.msra.gmra.mrb[16].mxu0 %vm510_vm2, %v2412_v31 }
 0x4ae   : > { %v2482_v10 = vpop.f32.mrb[14].mxu0 }
 0x4af   : > { %v2486_v33 = vmul.f32 0.0078125, %v2482_v10  ;;  %v5188_v36 = vpop.f32.mrb[15].mxu0 }
 0x4b1   : > { %5217 = vmatmul.mubr.msk.f32.vlgmr.msra.gmra.mrb[2].mxu1 %vm555_vm1, %v2486_v33  ;;  %v2561_v37 = vmul.f32 %v2486_v33, %v2486_v33 }
 0x4b2   : > { %5630 = vmatpush3.bf16.msra.mxu1 %v6834_v5  ;;  %5227 = vmatprep.mubr.msk.f32.mxu1 %vm6198_vm0, %v6199_v1  ;;  %v2833_v5 = vld [vmem:[#allocation6 + $0x50] sm:$0xff]  ;;  %v2836_v1 = vld [vmem:[#allocation6 + $0x68] sm:$0xff] }
 0x4b3   : > { %5631 = vmatprep.subr.bf16.mxu1 %v6197_v0  ;;  %v5638_v49 = vpack.c.bf16 %v2834_v48, %v2833_v5  ;;  %v2835_v0 = vld [vmem:[#allocation6 + $0x60] sm:$0xff] }
 0x4b4   : > { %v5642_v50 = vpack.c.bf16 %v2836_v1, %v2835_v0 }
 0x4b6   : > { %5633 = vmatpush3.bf16.msra.mxu1 %v5626_v32 }
 0x4b7   : > { %5635 = vmatprep.subr.bf16.mxu1 %v5634_v47 }
 0x4be   : > { %v2556_v20 = vpop.f32.mrb[16].mxu0 }
 0x4bf   : > { %v2560_v38 = vmul.f32 0.0078125, %v2556_v20  ;;  %v5207_v40 = vpop.f32.mrb[17].mxu0 }
 0x4c1   : > { %v2562_v41 = vsub.f32 %v2560_v38, %v2561_v37 }
 0x4c3   : > { %v2563_v42 = vmax.f32 %v2562_v41, 0.0 }
 0x4c5   : > { %5228 = vmatmul.mubr.msk.f32.vlgmr.msra.gmra.mrb[4].mxu1 %vm555_vm1, %v2563_v42 }
 0x4c6   : > { %5637 = vmatpush3.bf16.msra.mxu1 %v5634_v47  ;;  %5246 = vmatprep.mubr.msk.f32.mxu1 %vm510_vm2, %v2822_v53 }
 0x4c7   : > { %5639 = vmatprep.subr.bf16.mxu1 %v5638_v49 }
 0x4ca   : > { %5641 = vmatpush3.bf16.msra.mxu1 %v5638_v49 }
 0x4cb   : > { %5643 = vmatprep.subr.bf16.mxu1 %v5642_v50 }
 0x4ce   : > { %5645 = vmatpush3.bf16.msra.mxu1 %v5642_v50 }
 0x4cf   : > { %5647 = vmatprep.subr.bf16.mxu1 %v5646_v54 }
 0x4d2   : > { %5649 = vmatpush3.bf16.msra.mxu1 %v5646_v54 }
 0x4d3   : > { %5651 = vmatprep.subr.bf16.mxu1 %v6923_v2 }
 0x584   : > { %v2633_v55 = vpop.f32.mrb[2].mxu1 }
 0x585   : > { %v5218_v57 = vpop.f32.mrb[3].mxu1 }
 0x598   : > { %v2706_v58 = vpop.f32.mrb[4].mxu1 }
 0x599   : > { %v2707_v59 = vadd.f32 1e-05, %v2706_v58  ;;  %v5229_v61 = vpop.f32.mrb[5].mxu1 }
 0x59b   : > { %6023 = vrsqrt.f32 %v2707_v59 }
 0x5a5   : > { %v6024_v8 = vpop.eup %6023 }
 0x5a6   : > { %v2711_v9 = vmul.f32 %v6024_v8, %v2361_v3  ;;  %v2816_v3 = vld [vmem:[#allocation6 + $0x10] sm:$0xff]  ;;  %v2817_v8 = vld [vmem:[#allocation6 + $0x18] sm:$0xff] }
 0x5a8   : > { %v2712_v15 = vmul.f32 %v2711_v9, %v2633_v55  ;;  %v2718_v35 = vrot.slane %v2711_v9, %v6582_v45 }
 0x5aa   : > { %v2713_v11 = vsub.f32 %v2362_v6, %v2712_v15  ;;  %v2720_v12 = vmul.f32 %v2718_v35, %v6844_v17  ;;  %v2721_v13 = vmul.f32 %v2718_v35, %v6842_v14  ;;  %v2722_v16 = vmul.f32 %v2718_v35, %v6858_v29 }
 0x5ab   : > { %v2723_v18 = vmul.f32 %v2718_v35, %v6854_v24  ;;  %v2724_v21 = vmul.f32 %v2718_v35, %v6871_v43  ;;  %v2725_v22 = vmul.f32 %v2718_v35, %v6866_v39  ;;  %v2726_v23 = vmul.f32 %v2718_v35, %v6885_v7 }
 0x5ac   : > { %v2732_v19 = vrot.slane %v2713_v11, %v6582_v45  ;;  %v2727_v25 = vmul.f32 %v2718_v35, %v6883_v63  ;;  %v5654_v35 = vpack.c.bf16 %v2817_v8, %v2816_v3  ;;  %v3419_v3 = vld [vmem:[#allocation6 + $0x128] sm:$0xff] }
 0x5ae   : > { %v2734_v26 = vadd.f32 %v2732_v19, %v2720_v12  ;;  %v2735_v27 = vadd.f32 %v2732_v19, %v2721_v13  ;;  %v2736_v30 = vadd.f32 %v2732_v19, %v2722_v16  ;;  %v2737_v17 = vadd.f32 %v2732_v19, %v2723_v18  ;;  %v2818_v12 = vld [vmem:[#allocation6 + $0x20] sm:$0xff]  ;;  %v2819_v13 = vld [vmem:[#allocation6 + $0x28] sm:$0xff] }
 0x5af   : > { %v2738_v31 = vadd.f32 %v2732_v19, %v2724_v21  ;;  %v2739_v14 = vadd.f32 %v2732_v19, %v2725_v22  ;;  %v2740_v34 = vadd.f32 %v2732_v19, %v2726_v23  ;;  %v6942_v29 = vadd.f32 %v2732_v19, %v2727_v25  ;;  %v2820_v21 = vld [vmem:[#allocation6 + $0x30] sm:$0xff]  ;;  %v2821_v22 = vld [vmem:[#allocation6 + $0x38] sm:$0xff] }
 0x5b0   : > { %v4538_v24 = vmul.f32 -1.442695, %v2734_v26  ;;  %v4539_v4 = vmul.f32 -1.442695, %v2735_v27  ;;  %v4540_v45 = vmul.f32 -1.442695, %v2736_v30  ;;  %v5658_v18 = vpack.c.bf16 %v2819_v13, %v2818_v12 }
 0x5b1   : > { %v4541_v32 = vmul.f32 -1.442695, %v2737_v17  ;;  %v4542_v43 = vmul.f32 -1.442695, %v2738_v31  ;;  %v4543_v39 = vmul.f32 -1.442695, %v2739_v14 }
 0x5b2   : > { %6025 = vpow2.f32 %v4538_v24  ;;  %v4544_v7 = vmul.f32 -1.442695, %v2740_v34  ;;  %v4545_v63 = vmul.f32 -1.442695, %v6942_v29  ;;  %v3569_v12 = vld [vmem:[#allocation6 + $0x148] sm:$0xff] }
 0x5b3   : > { %6027 = vpow2.f32 %v4539_v4  ;;  %v3110_v4 = vld [vmem:[#allocation6 + $0xa0] sm:$0xff] }
 0x5b4   : > { %6029 = vpow2.f32 %v4540_v45  ;;  %v3111_v45 = vld [vmem:[#allocation6 + $0xa8] sm:$0xff] }
 0x5b5   : > { %6031 = vpow2.f32 %v4541_v32 }
 0x5b6   : > { %6033 = vpow2.f32 %v4542_v43  ;;  %v5674_v43 = vpack.c.bf16 %v3111_v45, %v3110_v4 }
 0x5b7   : > { %6035 = vpow2.f32 %v4543_v39 }
 0x5b8   : > { %6037 = vpow2.f32 %v4544_v7  ;;  %v3113_v7 = vld [vmem:[#allocation6 + $0xb8] sm:$0xff] }
 0x5b9   : > { %6039 = vpow2.f32 %v4545_v63 }
 0x5bc   : > { %v6026_v10 = vpop.eup %6025 }
 0x5bd   : > { %v6028_v33 = vpop.eup %6027  ;;  %v2766_v36 = vadd.f32 1.0, %v6026_v10 }
 0x5be   : > { %v6030_v20 = vpop.eup %6029  ;;  %v2767_v37 = vadd.f32 1.0, %v6028_v33 }
 0x5bf   : > { %v6032_v38 = vpop.eup %6031  ;;  %v2768_v40 = vadd.f32 1.0, %v6030_v20  ;;  %6041 = vrcp.f32 %v2766_v36  ;;  %v3260_v36 = vld [vmem:[#allocation6 + $0xc0] sm:$0xff]  ;;  %v3261_v20 = vld [vmem:[#allocation6 + $0xc8] sm:$0xff] }
 0x5c0   : > { %v6034_v41 = vpop.eup %6033  ;;  %v2769_v42 = vadd.f32 1.0, %v6032_v38  ;;  %6043 = vrcp.f32 %v2767_v37  ;;  %v5682_v38 = vpack.c.bf16 %v3261_v20, %v3260_v36  ;;  %v3727_v36 = vld [vmem:[#allocation6 + $0x1a8] sm:$0xff] }
 0x5c1   : > { %v6036_v44 = vpop.eup %6035  ;;  %v2770_v46 = vadd.f32 1.0, %v6034_v41  ;;  %6045 = vrcp.f32 %v2768_v40  ;;  %v3262_v41 = vld [vmem:[#allocation6 + $0xd0] sm:$0xff] }
 0x5c2   : > { %v6038_v47 = vpop.eup %6037  ;;  %v2771_v5 = vadd.f32 1.0, %v6036_v44  ;;  %6047 = vrcp.f32 %v2769_v42  ;;  %v3263_v42 = vld [vmem:[#allocation6 + $0xd8] sm:$0xff] }
 0x5c3   : > { %v6040_v48 = vpop.eup %6039  ;;  %v2772_v49 = vadd.f32 1.0, %v6038_v47  ;;  %6049 = vrcp.f32 %v2770_v46  ;;  %v5686_v44 = vpack.c.bf16 %v3263_v42, %v3262_v41  ;;  %v3264_v47 = vld [vmem:[#allocation6 + $0xe0] sm:$0xff]  ;;  %v3729_v41 = vld [vmem:[#allocation6 + $0x1b8] sm:$0xff] }
 0x5c4   : > { %v2773_v0 = vadd.f32 1.0, %v6040_v48  ;;  %6051 = vrcp.f32 %v2771_v5  ;;  %v3265_v5 = vld [vmem:[#allocation6 + $0xe8] sm:$0xff] }
 0x5c5   : > { %6053 = vrcp.f32 %v2772_v49  ;;  %v5690_v49 = vpack.c.bf16 %v3265_v5, %v3264_v47 }
 0x5c6   : > { %6055 = vrcp.f32 %v2773_v0 }
 0x5c9   : > { %v6042_v1 = vpop.eup %6041 }
 0x5ca   : > { %v6044_v50 = vpop.eup %6043  ;;  %v2790_v51 = vmul.f32 %v6042_v1, %v2734_v26  ;;  %v3106_v26 = vld [vmem:[#allocation6 + $0x80] sm:$0xff]  ;;  %v3267_v1 = vld [vmem:[#allocation6 + $0xf8] sm:$0xff] }
 0x5cb   : > { %v6046_v52 = vpop.eup %6045  ;;  %v2791_v53 = vmul.f32 %v6044_v50, %v2735_v27  ;;  %v3107_v27 = vld [vmem:[#allocation6 + $0x88] sm:$0xff] }
 0x5cc   : > { %v6048_v54 = vpop.eup %6047  ;;  %v2792_v56 = vmul.f32 %v6046_v52, %v2736_v30  ;;  %2798 = vst.msk [vmem:[#allocation2 + $0x11] sm:$0xff] %vm510_vm2, %v2790_v51 }
 0x5cd   : > { %v6050_v62 = vpop.eup %6049  ;;  %v2793_v55 = vmul.f32 %v6048_v54, %v2737_v17  ;;  %2799 = vst.msk [vmem:[#allocation2 + $0x21] sm:$0xff] %vm510_vm2, %v2791_v53  ;;  %v5666_v17 = vpack.c.bf16 %v3107_v27, %v3106_v26  ;;  %v3414_v53 = vld [vmem:[#allocation6 + $0x100] sm:$0xff]  ;;  %v3415_v54 = vld [vmem:[#allocation6 + $0x108] sm:$0xff] }
 0x5ce   : > { %v6052_v57 = vpop.eup %6051  ;;  %v2794_v58 = vmul.f32 %v6050_v62, %v2738_v31  ;;  %2800 = vst.msk [vmem:[#allocation2 + $0x31] sm:$0xff] %vm510_vm2, %v2792_v56  ;;  %v5698_v62 = vpack.c.bf16 %v3415_v54, %v3414_v53  ;;  %v3572_v26 = vld [vmem:[#allocation6 + $0x160] sm:$0xff]  ;;  %v3573_v27 = vld [vmem:[#allocation6 + $0x168] sm:$0xff] }
 0x5cf   : > { %v6054_v59 = vpop.eup %6053  ;;  %v2795_v61 = vmul.f32 %v6052_v57, %v2739_v14  ;;  %2801 = vst.msk [vmem:[#allocation2 + $0x41] sm:$0xff] %vm510_vm2, %v2793_v55  ;;  %v3108_v14 = vld [vmem:[#allocation6 + $0x90] sm:$0xff]  ;;  %v3881_v53 = vld [vmem:[#allocation6 + $0x1e8] sm:$0xff] }
 0x5d0   : > { %v6056_v9 = vpop.eup %6055  ;;  %v2796_v6 = vmul.f32 %v6054_v59, %v2740_v34  ;;  %2802 = vst.msk [vmem:[#allocation2 + $0x51] sm:$0xff] %vm510_vm2, %v2794_v58  ;;  %v3109_v34 = vld [vmem:[#allocation6 + $0x98] sm:$0xff]  ;;  %v3416_v57 = vld [vmem:[#allocation6 + $0x110] sm:$0xff] }
 0x5d1   : > { %v2797_v15 = vmul.f32 %v6056_v9, %v6942_v29  ;;  %2803 = vst.msk [vmem:[#allocation2 + $0x61] sm:$0xff] %vm510_vm2, %v2795_v61  ;;  %v5670_v29 = vpack.c.bf16 %v3109_v34, %v3108_v14  ;;  %v3417_v58 = vld [vmem:[#allocation6 + $0x118] sm:$0xff]  ;;  %v3418_v61 = vld [vmem:[#allocation6 + $0x120] sm:$0xff]  ;;  %v3420_v9 = vld [vmem:[#allocation6 + $0x130] sm:$0xff] }
 0x5d2   : > { %2804 = vst.msk [vmem:[#allocation2 + $0x71] sm:$0xff] %vm510_vm2, %v2796_v6  ;;  %v5702_v59 = vpack.c.bf16 %v3417_v58, %v3416_v57  ;;  %v5706_v8 = vpack.c.bf16 %v3419_v3, %v3418_v61  ;;  %v3421_v6 = vld [vmem:[#allocation6 + $0x138] sm:$0xff]  ;;  %v3574_v14 = vld [vmem:[#allocation6 + $0x170] sm:$0xff]  ;;  %v4030_v58 = vld [vmem:[#allocation6 + $0x200] sm:$0xff] }
 0x5d3   : > { %2805 = vst.msk [vmem:[#allocation2 + $0x81] sm:$0xff] %vm510_vm2, %v2797_v15  ;;  %v6954_v11 = vld [vmem:[#allocation2 + $0x11] sm:$0xff]  ;;  %v5710_v15 = vpack.c.bf16 %v3421_v6, %v3420_v9  ;;  %v4034_v3 = vld [vmem:[#allocation6 + $0x220] sm:$0xff] }
 0x5d4   : > { %5247 = vmatmul.mubr.msk.f32.vlgmr.msra.gmra.mrb[6].mxu1 %vm510_vm2, %v6954_v11  ;;  %v6958_v16 = vld [vmem:[#allocation2 + $0x21] sm:$0xff]  ;;  %v6985_v24 = vld [vmem:[#allocation2 + $0x10] sm:$0xff]  ;;  %v3575_v34 = vld [vmem:[#allocation6 + $0x178] sm:$0xff] }
 0x5d5   : > { %5653 = vmatpush3.bf16.msra.mxu1 %v6923_v2  ;;  %5249 = vmatprep.mubr.msk.f32.mxu1 %vm510_vm2, %v6958_v16  ;;  %v6963_v19 = vld [vmem:[#allocation2 + $0x31] sm:$0xff]  ;;  %v5662_v2 = vpack.c.bf16 %v2821_v22, %v2820_v21  ;;  %v6989_v32 = vld [vmem:[#allocation2 + $0x20] sm:$0xff] }
 0x5d6   : > { %5655 = vmatprep.subr.bf16.mxu1 %v5654_v35  ;;  %v6967_v23 = vld [vmem:[#allocation2 + $0x41] sm:$0xff]  ;;  %v6993_v39 = vld [vmem:[#allocation2 + $0x30] sm:$0xff]  ;;  %v3571_v22 = vld [vmem:[#allocation6 + $0x158] sm:$0xff] }
 0x5d7   : > { %v6971_v25 = vld [vmem:[#allocation2 + $0x51] sm:$0xff]  ;;  %v6997_v63 = vld [vmem:[#allocation2 + $0x40] sm:$0xff] }
 0x5d8   : > { %5250 = vmatmul.mubr.msk.f32.gmra.mrb[8].mxu1 %vm510_vm2, %v6963_v19  ;;  %v6975_v30 = vld [vmem:[#allocation2 + $0x61] sm:$0xff]  ;;  %v7001_v33 = vld [vmem:[#allocation2 + $0x50] sm:$0xff]  ;;  %v3883_v57 = vld [vmem:[#allocation6 + $0x1f8] sm:$0xff] }
 0x5d9   : > { %5657 = vmatpush3.bf16.msra.mxu1 %v5654_v35  ;;  %5252 = vmatprep.mubr.msk.f32.mxu1 %vm510_vm2, %v6967_v23  ;;  %v6979_v31 = vld [vmem:[#allocation2 + $0x71] sm:$0xff]  ;;  %v7005_v37 = vld [vmem:[#allocation2 + $0x60] sm:$0xff] }
 0x5da   : > { %5659 = vmatprep.subr.bf16.mxu1 %v5658_v18  ;;  %v7009_v40 = vld [vmem:[#allocation2 + $0x70] sm:$0xff]  ;;  %v7019_v48 = vld [vmem:[#allocation2 + $0x22] sm:$0xff]  ;;  %v4037_v6 = vld [vmem:[#allocation6 + $0x238] sm:$0xff] }
 0x5db   : > { %v7015_v46 = vld [vmem:[#allocation2 + $0x12] sm:$0xff]  ;;  %v7027_v50 = vld [vmem:[#allocation2 + $0x42] sm:$0xff] }
 0x5dc   : > { %5253 = vmatmul.mubr.msk.f32.gmra.mrb[10].mxu1 %vm510_vm2, %v6971_v25  ;;  %v7023_v0 = vld [vmem:[#allocation2 + $0x32] sm:$0xff]  ;;  %v7035_v56 = vld [vmem:[#allocation2 + $0x62] sm:$0xff] }
 0x5dd   : > { %5661 = vmatpush3.bf16.msra.mxu1 %v5658_v18  ;;  %5255 = vmatprep.mubr.msk.f32.mxu1 %vm510_vm2, %v6975_v30  ;;  %v7031_v52 = vld [vmem:[#allocation2 + $0x52] sm:$0xff]  ;;  %v3568_v35 = vld [vmem:[#allocation6 + $0x140] sm:$0xff] }
 0x5de   : > { %5663 = vmatprep.subr.bf16.mxu1 %v5662_v2  ;;  %v7039_v55 = vld [vmem:[#allocation2 + $0x72] sm:$0xff]  ;;  %v5714_v13 = vpack.c.bf16 %v3569_v12, %v3568_v35  ;;  %v7057_v18 = vld [vmem:[#allocation2 + $0x80] sm:$0xff]  ;;  %v6062_v12 = vld [vmem:[%s6412_s19 + $0x28] sm:$0xff] }
 0x5df   : > { %v3570_v21 = vld [vmem:[#allocation6 + $0x150] sm:$0xff]  ;;  %v7075_v45 = vld [vmem:[#allocation2 + $0x81] sm:$0xff]  ;;  %v4178_v35 = vld [vmem:[%s7247_s12 + $0x18] sm:$0xff] }
 0x5e0   : > { %5256 = vmatmul.mubr.msk.f32.gmra.mrb[12].mxu1 %vm510_vm2, %v6979_v31  ;;  %v7093_v5 = vld [vmem:[#allocation2 + $0x82] sm:$0xff]  ;;  %v4032_v61 = vld [vmem:[#allocation6 + $0x210] sm:$0xff] }
 0x5e1   : > { %5665 = vmatpush3.bf16.msra.mxu1 %v5662_v2  ;;  %5274 = vmatprep.mubr.msk.f32.mxu1 %vm510_vm2, %v6638_v60  ;;  %v3112_v60 = vld [vmem:[#allocation6 + $0xb0] sm:$0xff]  ;;  %v5718_v2 = vpack.c.bf16 %v3571_v22, %v3570_v21  ;;  %v4626_v21 = vld [vmem:[%s7248_s13] ss:$0 sm:$0xff] }
 0x5e2   : > { %5667 = vmatprep.subr.bf16.mxu1 %v5666_v17  ;;  %v5678_v10 = vpack.c.bf16 %v3113_v7, %v3112_v60  ;;  %v3725_v60 = vld [vmem:[#allocation6 + $0x198] sm:$0xff]  ;;  %v4036_v9 = vld [vmem:[#allocation6 + $0x230] sm:$0xff] }
 0x5e4   : > { %5275 = vmatmul.mubr.msk.f32.vlgmr.msra.gmra.mrb[6].mxu1 %vm510_vm2, %v6985_v24 }
 0x5e5   : > { %5669 = vmatpush3.bf16.msra.mxu1 %v5666_v17  ;;  %5277 = vmatprep.mubr.msk.f32.mxu1 %vm510_vm2, %v6989_v32  ;;  %v5722_v17 = vpack.c.bf16 %v3573_v27, %v3572_v26 }
 0x5e6   : > { %5671 = vmatprep.subr.bf16.mxu1 %v5670_v29 }
 0x5e8   : > { %5278 = vmatmul.mubr.msk.f32.gmra.mrb[8].mxu1 %vm510_vm2, %v6993_v39 }
 0x5e9   : > { %5673 = vmatpush3.bf16.msra.mxu1 %v5670_v29  ;;  %5280 = vmatprep.mubr.msk.f32.mxu1 %vm510_vm2, %v6997_v63  ;;  %v3722_v29 = vld [vmem:[#allocation6 + $0x180] sm:$0xff] }
 0x5ea   : > { %5675 = vmatprep.subr.bf16.mxu1 %v5674_v43 }
 0x5ec   : > { %5281 = vmatmul.mubr.msk.f32.gmra.mrb[10].mxu1 %vm510_vm2, %v7001_v33 }
 0x5ed   : > { %5677 = vmatpush3.bf16.msra.mxu1 %v5674_v43  ;;  %5283 = vmatprep.mubr.msk.f32.mxu1 %vm510_vm2, %v7005_v37  ;;  %v3724_v43 = vld [vmem:[#allocation6 + $0x190] sm:$0xff] }
 0x5ee   : > { %5679 = vmatprep.subr.bf16.mxu1 %v5678_v10  ;;  %v5734_v7 = vpack.c.bf16 %v3725_v60, %v3724_v43 }
 0x5f0   : > { %5284 = vmatmul.mubr.msk.f32.gmra.mrb[12].mxu1 %vm510_vm2, %v7009_v40 }
 0x5f1   : > { %5681 = vmatpush3.bf16.msra.mxu1 %v5678_v10  ;;  %5302 = vmatprep.mubr.msk.f32.mxu1 %vm510_vm2, %v6667_v28  ;;  %v3266_v28 = vld [vmem:[#allocation6 + $0xf0] sm:$0xff]  ;;  %v3726_v10 = vld [vmem:[#allocation6 + $0x1a0] sm:$0xff] }
 0x5f2   : > { %5683 = vmatprep.subr.bf16.mxu1 %v5682_v38  ;;  %v5694_v51 = vpack.c.bf16 %v3267_v1, %v3266_v28  ;;  %v5738_v20 = vpack.c.bf16 %v3727_v36, %v3726_v10  ;;  %v3879_v28 = vld [vmem:[#allocation6 + $0x1d8] sm:$0xff] }
 0x5f4   : > { %5303 = vmatmul.mubr.msk.f32.vlgmr.msra.gmra.mrb[6].mxu1 %vm510_vm2, %v7015_v46 }
 0x5f5   : > { %5685 = vmatpush3.bf16.msra.mxu1 %v5682_v38  ;;  %5305 = vmatprep.mubr.msk.f32.mxu1 %vm510_vm2, %v7019_v48  ;;  %v3728_v38 = vld [vmem:[#allocation6 + $0x1b0] sm:$0xff] }
 0x5f6   : > { %5687 = vmatprep.subr.bf16.mxu1 %v5686_v44  ;;  %v5742_v42 = vpack.c.bf16 %v3729_v41, %v3728_v38 }
 0x5f8   : > { %5306 = vmatmul.mubr.msk.f32.gmra.mrb[8].mxu1 %vm510_vm2, %v7023_v0 }
 0x5f9   : > { %5689 = vmatpush3.bf16.msra.mxu1 %v5686_v44  ;;  %5308 = vmatprep.mubr.msk.f32.mxu1 %vm510_vm2, %v7027_v50  ;;  %v3876_v44 = vld [vmem:[#allocation6 + $0x1c0] sm:$0xff] }
 0x5fa   : > { %5691 = vmatprep.subr.bf16.mxu1 %v5690_v49 }
 0x5fc   : > { %5309 = vmatmul.mubr.msk.f32.gmra.mrb[10].mxu1 %vm510_vm2, %v7031_v52 }
 0x5fd   : > { %5693 = vmatpush3.bf16.msra.mxu1 %v5690_v49  ;;  %5311 = vmatprep.mubr.msk.f32.mxu1 %vm510_vm2, %v7035_v56  ;;  %v3878_v49 = vld [vmem:[#allocation6 + $0x1d0] sm:$0xff] }
 0x5fe   : > { %5695 = vmatprep.subr.bf16.mxu1 %v5694_v51  ;;  %v5750_v1 = vpack.c.bf16 %v3879_v28, %v3878_v49 }
 0x600   : > { %5312 = vmatmul.mubr.msk.f32.gmra.mrb[12].mxu1 %vm510_vm2, %v7039_v55 }
 0x601   : > { %5697 = vmatpush3.bf16.msra.mxu1 %v5694_v51  ;;  %5330 = vmatprep.mubr.msk.f32.mxu1 %vm510_vm2, %v6985_v24  ;;  %v3723_v24 = vld [vmem:[#allocation6 + $0x188] sm:$0xff]  ;;  %v3880_v51 = vld [vmem:[#allocation6 + $0x1e0] sm:$0xff] }
 0x602   : > { %5699 = vmatprep.subr.bf16.mxu1 %v5698_v62  ;;  %v5730_v4 = vpack.c.bf16 %v3723_v24, %v3722_v29  ;;  %v5754_v54 = vpack.c.bf16 %v3881_v53, %v3880_v51 }
 0x604   : > { %5331 = vmatmul.mubr.msk.f32.vlgmr.msra.gmra.mrb[6].mxu1 %vm510_vm2, %v6989_v32 }
 0x605   : > { %5701 = vmatpush3.bf16.msra.mxu1 %v5698_v62  ;;  %5333 = vmatprep.mubr.msk.f32.mxu1 %vm510_vm2, %v6993_v39  ;;  %v3882_v62 = vld [vmem:[#allocation6 + $0x1f0] sm:$0xff] }
 0x606   : > { %5703 = vmatprep.subr.bf16.mxu1 %v5702_v59 }
 0x608   : > { %5334 = vmatmul.mubr.msk.f32.gmra.mrb[8].mxu1 %vm510_vm2, %v6997_v63 }
 0x609   : > { %5705 = vmatpush3.bf16.msra.mxu1 %v5702_v59  ;;  %5336 = vmatprep.mubr.msk.f32.mxu1 %vm510_vm2, %v7001_v33  ;;  %v4031_v59 = vld [vmem:[#allocation6 + $0x208] sm:$0xff] }
 0x60a   : > { %5707 = vmatprep.subr.bf16.mxu1 %v5706_v8 }
 0x60c   : > { %5337 = vmatmul.mubr.msk.f32.gmra.mrb[10].mxu1 %vm510_vm2, %v7005_v37 }
 0x60d   : > { %5709 = vmatpush3.bf16.msra.mxu1 %v5706_v8  ;;  %5339 = vmatprep.mubr.msk.f32.mxu1 %vm510_vm2, %v7009_v40  ;;  %v4035_v8 = vld [vmem:[#allocation6 + $0x228] sm:$0xff] }
 0x60e   : > { %5711 = vmatprep.subr.bf16.mxu1 %v5710_v15 }
 0x610   : > { %5340 = vmatmul.mubr.msk.f32.gmra.mrb[12].mxu1 %vm510_vm2, %v7057_v18 }
 0x611   : > { %5713 = vmatpush3.bf16.msra.mxu1 %v5710_v15  ;;  %5358 = vmatprep.mubr.msk.f32.mxu1 %vm510_vm2, %v6954_v11  ;;  %v5726_v11 = vpack.c.bf16 %v3575_v34, %v3574_v14  ;;  %v4177_v15 = vld [vmem:[%s7247_s12 + $0x10] sm:$0xff] }
 0x612   : > { %5715 = vmatprep.subr.bf16.mxu1 %v5714_v13 }
 0x614   : > { %5359 = vmatmul.mubr.msk.f32.vlgmr.msra.gmra.mrb[6].mxu1 %vm510_vm2, %v6958_v16 }
 0x615   : > { %5717 = vmatpush3.bf16.msra.mxu1 %v5714_v13  ;;  %5361 = vmatprep.mubr.msk.f32.mxu1 %vm510_vm2, %v6963_v19  ;;  %v6063_v13 = vld [vmem:[%s6412_s19 + $0x30] sm:$0xff] }
 0x616   : > { %5719 = vmatprep.subr.bf16.mxu1 %v5718_v2 }
 0x618   : > { %5362 = vmatmul.mubr.msk.f32.gmra.mrb[8].mxu1 %vm510_vm2, %v6967_v23 }
 0x619   : > { %5721 = vmatpush3.bf16.msra.mxu1 %v5718_v2  ;;  %5364 = vmatprep.mubr.msk.f32.mxu1 %vm510_vm2, %v6971_v25 }
 0x61a   : > { %5723 = vmatprep.subr.bf16.mxu1 %v5722_v17 }
 0x61c   : > { %5365 = vmatmul.mubr.msk.f32.gmra.mrb[10].mxu1 %vm510_vm2, %v6975_v30 }
 0x61d   : > { %5725 = vmatpush3.bf16.msra.mxu1 %v5722_v17  ;;  %5367 = vmatprep.mubr.msk.f32.mxu1 %vm510_vm2, %v6979_v31 }
 0x61e   : > { %5727 = vmatprep.subr.bf16.mxu1 %v5726_v11 }
 0x620   : > { %5368 = vmatmul.mubr.msk.f32.gmra.mrb[12].mxu1 %vm510_vm2, %v7075_v45 }
 0x621   : > { %5729 = vmatpush3.bf16.msra.mxu1 %v5726_v11  ;;  %5386 = vmatprep.mubr.msk.f32.mxu1 %vm510_vm2, %v7015_v46  ;;  %v3877_v46 = vld [vmem:[#allocation6 + $0x1c8] sm:$0xff] }
 0x622   : > { %5731 = vmatprep.subr.bf16.mxu1 %v5730_v4  ;;  %v5746_v47 = vpack.c.bf16 %v3877_v46, %v3876_v44 }
 0x624   : > { %5387 = vmatmul.mubr.msk.f32.vlgmr.msra.gmra.mrb[6].mxu1 %vm510_vm2, %v7019_v48 }
 0x625   : > { %5733 = vmatpush3.bf16.msra.mxu1 %v5730_v4  ;;  %5389 = vmatprep.mubr.msk.f32.mxu1 %vm510_vm2, %v7023_v0 }
 0x626   : > { %5735 = vmatprep.subr.bf16.mxu1 %v5734_v7 }
 0x628   : > { %5390 = vmatmul.mubr.msk.f32.gmra.mrb[8].mxu1 %vm510_vm2, %v7027_v50 }
 0x629   : > { %5737 = vmatpush3.bf16.msra.mxu1 %v5734_v7  ;;  %5392 = vmatprep.mubr.msk.f32.mxu1 %vm510_vm2, %v7031_v52 }
 0x62a   : > { %5739 = vmatprep.subr.bf16.mxu1 %v5738_v20 }
 0x62c   : > { %5393 = vmatmul.mubr.msk.f32.gmra.mrb[10].mxu1 %vm510_vm2, %v7035_v56 }
 0x62d   : > { %5741 = vmatpush3.bf16.msra.mxu1 %v5738_v20  ;;  %5395 = vmatprep.mubr.msk.f32.mxu1 %vm510_vm2, %v7039_v55 }
 0x62e   : > { %5743 = vmatprep.subr.bf16.mxu1 %v5742_v42 }
 0x630   : > { %5396 = vmatmul.mubr.msk.f32.gmra.mrb[12].mxu1 %vm510_vm2, %v7093_v5 }
 0x631   : > { %5745 = vmatpush3.bf16.msra.mxu1 %v5742_v42  ;;  %5414 = vmatprep.mubr.msk.f32.mxu1 %vm510_vm2, %v6989_v32  ;;  %v5758_v32 = vpack.c.bf16 %v3883_v57, %v3882_v62 }
 0x632   : > { %5747 = vmatprep.subr.bf16.mxu1 %v5746_v47 }
 0x634   : > { %5415 = vmatmul.mubr.msk.f32.vlgmr.msra.gmra.mrb[6].mxu1 %vm510_vm2, %v6993_v39  ;;  %v3720_v39 = vld [vmem:[#allocation2 + $0x90] sm:$0xff] }
 0x635   : > { %5749 = vmatpush3.bf16.msra.mxu1 %v5746_v47  ;;  %5417 = vmatprep.mubr.msk.f32.mxu1 %vm510_vm2, %v6997_v63  ;;  %v5762_v63 = vpack.c.bf16 %v4031_v59, %v4030_v58 }
 0x636   : > { %5751 = vmatprep.subr.bf16.mxu1 %v5750_v1 }
 0x638   : > { %5418 = vmatmul.mubr.msk.f32.gmra.mrb[8].mxu1 %vm510_vm2, %v7001_v33  ;;  %v4033_v33 = vld [vmem:[#allocation6 + $0x218] sm:$0xff] }
 0x639   : > { %5753 = vmatpush3.bf16.msra.mxu1 %v5750_v1  ;;  %5420 = vmatprep.mubr.msk.f32.mxu1 %vm510_vm2, %v7005_v37  ;;  %v5766_v37 = vpack.c.bf16 %v4033_v33, %v4032_v61 }
 0x63a   : > { %5755 = vmatprep.subr.bf16.mxu1 %v5754_v54 }
 0x63c   : > { %5421 = vmatmul.mubr.msk.f32.gmra.mrb[10].mxu1 %vm510_vm2, %v7009_v40  ;;  %v5770_v40 = vpack.c.bf16 %v4035_v8, %v4034_v3 }
 0x63d   : > { %5757 = vmatpush3.bf16.msra.mxu1 %v5754_v54  ;;  %5423 = vmatprep.mubr.msk.f32.mxu1 %vm510_vm2, %v7057_v18  ;;  %v6064_v18 = vld [vmem:[%s6412_s19 + $0x38] sm:$0xff] }
 0x63e   : > { %5759 = vmatprep.subr.bf16.mxu1 %v5758_v32 }
 0x640   : > { %5424 = vmatmul.mubr.msk.f32.gmra.mrb[12].mxu1 %vm510_vm2, %v3720_v39 }
 0x641   : > { %5761 = vmatpush3.bf16.msra.mxu1 %v5758_v32  ;;  %5442 = vmatprep.mubr.msk.f32.mxu1 %vm510_vm2, %v6958_v16  ;;  %v5774_v16 = vpack.c.bf16 %v4037_v6, %v4036_v9 }
 0x642   : > { %5763 = vmatprep.subr.bf16.mxu1 %v5762_v63 }
 0x644   : > { %5443 = vmatmul.mubr.msk.f32.vlgmr.msra.gmra.mrb[6].mxu1 %vm510_vm2, %v6963_v19  ;;  %v4175_v19 = vld [vmem:[%s7247_s12] sm:$0xff] }
 0x645   : > { %5765 = vmatpush3.bf16.msra.mxu1 %v5762_v63  ;;  %5445 = vmatprep.mubr.msk.f32.mxu1 %vm510_vm2, %v6967_v23  ;;  %v4176_v23 = vld [vmem:[%s7247_s12 + $0x8] sm:$0xff] }
 0x646   : > { %5767 = vmatprep.subr.bf16.mxu1 %v5766_v37 }
 0x648   : > { %5446 = vmatmul.mubr.msk.f32.gmra.mrb[8].mxu1 %vm510_vm2, %v6971_v25  ;;  %v3874_v25 = vld [vmem:[#allocation2 + $0x91] sm:$0xff] }
 0x649   : > { %5769 = vmatpush3.bf16.msra.mxu1 %v5766_v37  ;;  %5448 = vmatprep.mubr.msk.f32.mxu1 %vm510_vm2, %v6975_v30  ;;  %v5778_v30 = vpack.c.bf16 %v4176_v23, %v4175_v19 }
 0x64a   : > { %5771 = vmatprep.subr.bf16.mxu1 %v5770_v40 }
 0x64c   : > { %5449 = vmatmul.mubr.msk.f32.gmra.mrb[10].mxu1 %vm510_vm2, %v6979_v31  ;;  %v5782_v31 = vpack.c.bf16 %v4178_v35, %v4177_v15 }
 0x64d   : > { %5773 = vmatpush3.bf16.msra.mxu1 %v5770_v40  ;;  %5451 = vmatprep.mubr.msk.f32.mxu1 %vm510_vm2, %v7075_v45 }
 0x64e   : > { %5775 = vmatprep.subr.bf16.mxu1 %v5774_v16 }
 0x650   : > { %5452 = vmatmul.mubr.msk.f32.gmra.mrb[12].mxu1 %vm510_vm2, %v3874_v25 }
 0x651   : > { %5777 = vmatpush3.bf16.msra.mxu1 %v5774_v16  ;;  %5470 = vmatprep.mubr.msk.f32.mxu1 %vm510_vm2, %v7019_v48  ;;  %v4028_v48 = vld [vmem:[#allocation2 + $0x92] sm:$0xff] }
 0x652   : > { %5779 = vmatprep.subr.bf16.mxu1 %v5778_v30 }
 0x654   : > { %5471 = vmatmul.mubr.msk.f32.vlgmr.msra.gmra.mrb[6].mxu1 %vm510_vm2, %v7023_v0  ;;  %v6057_v0 = vld [vmem:[%s6412_s19] sm:$0xff] }
 0x655   : > { %5781 = vmatpush3.bf16.msra.mxu1 %v5778_v30  ;;  %5473 = vmatprep.mubr.msk.f32.mxu1 %vm510_vm2, %v7027_v50  ;;  %v6058_v50 = vld [vmem:[%s6412_s19 + $0x8] sm:$0xff] }
 0x656   : > { %5783 = vmatprep.subr.bf16.mxu1 %v5782_v31 }
 0x658   : > { %5474 = vmatmul.mubr.msk.f32.gmra.mrb[8].mxu1 %vm510_vm2, %v7031_v52  ;;  %v6059_v52 = vld [vmem:[%s6412_s19 + $0x10] sm:$0xff] }
 0x659   : > { %5476 = vmatprep.mubr.msk.f32.mxu1 %vm510_vm2, %v7035_v56  ;;  %5785 = vmatpush3.bf16.msra.mxu1 %v5782_v31  ;;  %v6060_v56 = vld [vmem:[%s6412_s19 + $0x18] sm:$0xff] }
 0x65c   : > { %5477 = vmatmul.mubr.msk.f32.gmra.mrb[10].mxu1 %vm510_vm2, %v7039_v55  ;;  %v6061_v55 = vld [vmem:[%s6412_s19 + $0x20] sm:$0xff]  ;;  %s7279_s19 = sld [smem:[#allocation17_spill]] }
 0x65d   : > { %5479 = vmatprep.mubr.msk.f32.mxu1 %vm510_vm2, %v7093_v5 }
 0x660   : > { %5480 = vmatmul.mubr.msk.f32.gmra.mrb[12].mxu1 %vm510_vm2, %v4028_v48 }
 0x661   : > { %5490 = vmatprep.mubr.msk.f32.mxu1 %vm555_vm1, %v6057_v0 }
 0x662   : > { %p7282_p1 = scmp.ne.s32.totalorder %s7279_s19, 0 }
 0x664   : > { %5491 = vmatmul.mubr.msk.f32.vlgmr.msra.gmra.mrb[6].mxu1 %vm555_vm1, %v6058_v50  ;;  %p6123_p2 = pnand %p6122_p12, %p7282_p1 }
 0x665   : > { %5493 = vmatprep.mubr.msk.f32.mxu1 %vm555_vm1, %v6059_v52 }
 0x666   : > { %p6124_p3 = pneg %p6123_p2 }
 0x668   : > { %5494 = vmatmul.mubr.msk.f32.gmra.mrb[8].mxu1 %vm555_vm1, %v6060_v56  ;;  %p6131_p11 = pnand %p6130_p8, %p6124_p3 }
 0x669   : > { %5496 = vmatprep.mubr.msk.f32.mxu1 %vm555_vm1, %v6061_v55 }
 0x66c   : > { %5497 = vmatmul.mubr.msk.f32.gmra.mrb[10].mxu1 %vm555_vm1, %v6062_v12 }
 0x66d   : > { %5499 = vmatprep.mubr.msk.f32.mxu1 %vm555_vm1, %v6063_v13 }
 0x670   : > { %5500 = vmatmul.mubr.msk.f32.gmra.mrb[12].mxu1 %vm555_vm1, %v6064_v18 }
 0x737   : > { %v5492_v22 = vpop.f32.mrb[6].mxu1 }
 0x738   : > { %v4316_v2 = vadd.f32 %v5492_v22, %v4626_v21  ;;  %v4269_v26 = vpop.f32.mrb[7].mxu1 }
 0x739   : > { %v4315_v27 = vadd.f32 %v4626_v21, %v4269_v26 }
 0x73a   : > { %4324 = vst.msk [vmem:[%s501_s16 + $0x8] sm:$0xff] %vm510_vm2, %v4316_v2 }
 0x73b   : > { %4323 = vst.msk [vmem:[%s501_s16] sm:$0xff] %vm510_vm2, %v4315_v27  ;;  %v5495_v17 = vpop.f32.mrb[8].mxu1 }
 0x73c   : > { %v4318_v14 = vadd.f32 %v5495_v17, %v4626_v21  ;;  %v4279_v34 = vpop.f32.mrb[9].mxu1 }
 0x73d   : > { %v4317_v11 = vadd.f32 %v4626_v21, %v4279_v34 }
 0x73e   : > { %4326 = vst.msk [vmem:[%s501_s16 + $0x18] sm:$0xff] %vm510_vm2, %v4318_v14 }
 0x73f   : > { %4325 = vst.msk [vmem:[%s501_s16 + $0x10] sm:$0xff] %vm510_vm2, %v4317_v11  ;;  %v5498_v29 = vpop.f32.mrb[10].mxu1 }
 0x740   : > { %v4320_v24 = vadd.f32 %v5498_v29, %v4626_v21  ;;  %v4289_v4 = vpop.f32.mrb[11].mxu1 }
 0x741   : > { %v4319_v45 = vadd.f32 %v4626_v21, %v4289_v4 }
 0x742   : > { %4328 = vst.msk [vmem:[%s501_s16 + $0x28] sm:$0xff] %vm510_vm2, %v4320_v24 }
 0x743   : > { %4327 = vst.msk [vmem:[%s501_s16 + $0x20] sm:$0xff] %vm510_vm2, %v4319_v45  ;;  %v5501_v43 = vpop.f32.mrb[12].mxu1 }
 0x744   : > { %v4322_v60 = vadd.f32 %v5501_v43, %v4626_v21  ;;  %v4299_v7 = vpop.f32.mrb[13].mxu1 }
 0x745   : > { %v4321_v10 = vadd.f32 %v4626_v21, %v4299_v7 }
 0x746   : > { %4330 = vst.msk [vmem:[%s501_s16 + $0x38] sm:$0xff] %vm510_vm2, %v4322_v60 }
 0x747   : > { %4329 = vst.msk [vmem:[%s501_s16 + $0x30] sm:$0xff] %vm510_vm2, %v4321_v10 }
 0x748   : > { %6134 = shalt.err (!%p6131_p11)
}
 0x749   : > { %s6135_s26 = scalar_lea.hbm %s7186_s15, 1024  ;;  %s6139_s25 = scalar_lea.hbm %s7281_s24, 2048 }
 0x74a   : > { %p6136_p13 = scmp.ne.s32.totalorder %s7186_s15, %s6135_s26  ;;  %p6140_p6 = scmp.lt.u32.totalorder %s7186_s15, %s7281_s24 }
 0x74b   : > { %p6141_p9 = scmp.lt.u32.totalorder %s6139_s25, %s6135_s26  ;;  %p6143_p12 = scmp.lt.u32.totalorder %s6135_s26, %s7186_s15 }
 0x74c   : > { %p6137_p5 = pnand %p6136_p13, %p7282_p1 }
 0x74d   : > { %p6142_p10 = por %p6141_p9, %p6140_p6 }
 0x74e   : > { %p6138_p0 = pneg %p6137_p5 }
 0x74f   : > { %p6144_p2 = por %p6143_p12, %p6142_p10 }
 0x751   : > { %p6145_p3 = pnand %p6144_p2, %p6138_p0 }
 0x753   : > { %6148 = shalt.err (!%p6145_p3)
}
 0x754   : > { %s6201_s29 = smov 128   ;;  %s6202_s23 = smov 8  }
 0x755   : > { %5930 = dma.vmem_to_hbm [thread:$0]  (%p7282_p1), %s7188_s28, 1024, %s7186_s15, %s7194_s17, %s6201_s29, %s6201_s29, %s6202_s23  }
 0x756 PF: > { %s7283_s21 = sld [smem:[#allocation14_spill]]  ;;  %s7284_s18 = sld [smem:[#allocation12_spill]] }
 0x757   : > { %s7285_s27 = sld [smem:[#allocation18_spill]] }
 0x75c   : > { %p5947_p4 = scmp.ge.s32.totalorder %s7283_s21, 2  ;;  %s4360_s14 = sand.u32 1, %s7284_s18  }
 0x75d   : > { %p7286_p7 = scmp.ne.s32.totalorder %s7285_s27, 0  ;;  %s4361_s26 = scalar_lea.sflag [#allocation5], %s4360_s14 }
 0x75f   : > { %p5940_p8 = pnand %p5947_p4, %p7286_p7 }
 0x761   : > { %6174 = dma.done.wait (!%p5940_p8), %s4361_s26, 1024  }
 0x762   : > { %6176 = vsyncadd (!%p5940_p8), %s4361_s26, 4294966272  ;;  %s7287_s16 = sld [smem:[#allocation15_spill]]  ;;  %s7288_s25 = sld [smem:[#allocation13_spill]] }
 0x763   : > { %s7289_s15 = sld [smem:[#allocation16_spill]]  ;;  %s7290_s29 = smov %s6183_s30 }
 0x768   : > { %p26_p11 = scmp.ge.s32.totalorder %s7287_s16, 4   ;;  %s7291_s30 = smov %s7288_s25 }
 0x76a   :  { %28 = sbr.rel (!%p26_p11) target bundleno = 7 (0x7), region = 142 }
 0x771   :  { %4366 = vsyncpa [#allocation4], 1 }
 0x772   :  { %4368 = vsyncpa [#allocation4 + $0x1], 1 }
 0x773   :  { %4369 = vsyncpa [#allocation7], 1 }
 0x774   :  { %4370 = vsyncpa [#allocation5], 1 }
 0x775   :  { %4372 = vsyncpa [#allocation5 + $0x1], 1 }

</bundles_post_ra>
